<compile_context>
chip_gen: v7x
topology: tpu7x:2x2x1
jax: 0.10.0
libtpu: 0.0.40
codegen_flags: <defaults>
</compile_context>

<pallas_src>
import math

import jax
import jax.numpy as jnp
from jax.experimental import pallas as pl
from jax.experimental.pallas import tpu as pltpu

_SQRT_2_OVER_PI = math.sqrt(2.0 / math.pi)


def _ff_kernel(x_ref, w1_ref, b1_ref, w2_ref, b2_ref, o_ref):
    # First linear: native-dtype operands into the MXU, accumulate in f32.
    h = jnp.dot(x_ref[...], w1_ref[...], preferred_element_type=jnp.float32)
    h = h + b1_ref[...].astype(jnp.float32)

    # tanh-approx GELU (exactly the PyTorch GELU module), elementwise in f32.
    # h*h*h instead of h**3 keeps the VALU chain to plain vmuls; tanh goes to the EUP.
    g = 0.5 * h * (1.0 + jnp.tanh(_SQRT_2_OVER_PI * (h + 0.044715 * (h * h * h))))

    # Second linear: cast the activation back to the matmul input dtype (bf16 stays bf16).
    o = jnp.dot(g.astype(w2_ref.dtype), w2_ref[...], preferred_element_type=jnp.float32)
    o = o + b2_ref[...].astype(jnp.float32)

    o_ref[...] = o.astype(o_ref.dtype)


def _round_up(n, m):
    return ((n + m - 1) // m) * m


def feed_forward(x, w1, b1, w2, b2, *, tile_m=256):
    """FeedForward forward pass.

    x : (B, S, D) activations.
    w1: (D, H), b1: (H,)   first Linear (weights stored transposed: in_features, out_features).
    w2: (H, D), b2: (D,)   second Linear.
    Dropout prob is 0.0 in the reference config => identity (omitted).
    """
    B, S, D = x.shape
    H = w1.shape[1]
    M = B * S

    # Lane-dense padding: last dims must be multiples of 128 (zero padding is exact here).
    Dp = _round_up(D, 128)
    Hp = _round_up(H, 128)

    # Row tile: large for MXU utilization, shrunk for tiny inputs, multiple of 8 (sublanes).
    tile_m = _round_up(min(tile_m, _round_up(M, 8)), 8)
    Mp = _round_up(M, tile_m)

    x2 = x.reshape(M, D)
    if (Mp, Dp) != (M, D):
        x2 = jnp.pad(x2, ((0, Mp - M), (0, Dp - D)))
    w1p = jnp.pad(w1, ((0, Dp - D), (0, Hp - H))) if (Dp, Hp) != (D, H) else w1
    w2p = jnp.pad(w2, ((0, Hp - H), (0, Dp - D))) if (Dp, Hp) != (D, H) else w2
    b1p = jnp.pad(b1, (0, Hp - H)).reshape(1, Hp)
    b2p = jnp.pad(b2, (0, Dp - D)).reshape(1, Dp)

    x_bytes = jnp.dtype(x.dtype).itemsize
    w_bytes = jnp.dtype(w1.dtype).itemsize

    # VMEM budget hint: double-buffered x/out tiles + resident (double-buffered) weights
    # + f32 intermediates, with margin; clamped to a safe range.
    block_bytes = (
        2 * tile_m * Dp * x_bytes          # x tile
        + 2 * tile_m * Dp * x_bytes        # out tile
        + 2 * (Dp * Hp + Hp) * w_bytes     # W1 + b1
        + 2 * (Hp * Dp + Dp) * w_bytes     # W2 + b2
        + 2 * tile_m * Hp * 4              # f32 h / g intermediates
    )
    vmem_limit = int(min(max(2 * block_bytes + (4 << 20), 32 << 20), 100 << 20))

    cost = pl.CostEstimate(
        flops=4 * Mp * Dp * Hp,            # two matmuls: 2 * (2*M*D*H)
        transcendentals=Mp * Hp,           # tanh in GELU
        bytes_accessed=(2 * Mp * Dp) * x_bytes
        + (Dp * Hp + Hp + Hp * Dp + Dp) * w_bytes,
    )

    out = pl.pallas_call(
        _ff_kernel,
        out_shape=jax.ShapeDtypeStruct((Mp, Dp), x.dtype),
        grid_spec=pltpu.PrefetchScalarGridSpec(
            num_scalar_prefetch=0,
            grid=(Mp // tile_m,),
            in_specs=[
                pl.BlockSpec((tile_m, Dp), lambda i: (i, 0)),   # x row tile
                pl.BlockSpec((Dp, Hp), lambda i: (0, 0)),       # W1 (resident)
                pl.BlockSpec((1, Hp), lambda i: (0, 0)),        # b1
                pl.BlockSpec((Hp, Dp), lambda i: (0, 0)),       # W2 (resident)
                pl.BlockSpec((1, Dp), lambda i: (0, 0)),        # b2
            ],
            out_specs=pl.BlockSpec((tile_m, Dp), lambda i: (i, 0)),
        ),
        compiler_params=pltpu.CompilerParams(
            dimension_semantics=("parallel",),   # rows shard across TCs on v7x; neutral elsewhere
            vmem_limit_bytes=vmem_limit,
        ),
        cost_estimate=cost,
    )(x2, w1p, b1p, w2p, b2p)

    return out[:M, :D].reshape(B, S, D)


def _reference(x, w1, b1, w2, b2):
    h = x @ w1 + b1
    g = 0.5 * h * (1.0 + jnp.tanh(_SQRT_2_OVER_PI * (h + 0.044715 * h ** 3)))
    return g @ w2 + b2


if __name__ == "__main__":
    key = jax.random.PRNGKey(0)

    def make_inputs(B, S, D, H, dtype):
        kx, kw1, kb1, kw2, kb2 = jax.random.split(key, 5)
        x = jax.random.normal(kx, (B, S, D), dtype=jnp.float32)
        lim1 = 1.0 / math.sqrt(D)
        w1 = jax.random.uniform(kw1, (D, H), minval=-lim1, maxval=lim1, dtype=jnp.float32)
        b1 = jax.random.uniform(kb1, (H,), minval=-lim1, maxval=lim1, dtype=jnp.float32)
        lim2 = 1.0 / math.sqrt(H)
        w2 = jax.random.uniform(kw2, (H, D), minval=-lim2, maxval=lim2, dtype=jnp.float32)
        b2 = jax.random.uniform(kb2, (D,), minval=-lim2, maxval=lim2, dtype=jnp.float32)
        return tuple(a.astype(dtype) for a in (x, w1, b1, w2, b2))

    # 1) f32, lane-dense shapes (D, H multiples of 128); M=512 -> two row tiles.
    B, S, D, H = 2, 256, 128, 256
    args = make_inputs(B, S, D, H, jnp.float32)
    out = jax.block_until_ready(feed_forward(*args))
    ref = _reference(*args)
    assert out.shape == (B, S, D)
    assert jnp.allclose(out, ref, atol=2e-3, rtol=2e-3), "f32 mismatch vs reference"

    # 2) bf16 operands (native MXU dtype), f32 accumulation inside the kernel.
    args_bf = make_inputs(B, S, D, H, jnp.bfloat16)
    out_bf = jax.block_until_ready(feed_forward(*args_bf))
    ref_bf = _reference(*(a.astype(jnp.float32) for a in args_bf))
    assert out_bf.dtype == jnp.bfloat16
    assert jnp.allclose(out_bf.astype(jnp.float32), ref_bf, atol=2e-2, rtol=2e-2), "bf16 mismatch"

    # 3) Non-lane-aligned shapes (original module scale) exercise the zero-padding path.
    args_small = make_inputs(2, 8, 32, 64, jnp.float32)
    out_s = jax.block_until_ready(feed_forward(*args_small))
    ref_s = _reference(*args_small)
    assert out_s.shape == (2, 8, 32)
    assert jnp.allclose(out_s, ref_s, atol=2e-3, rtol=2e-3), "padded-path mismatch"

    print("KERNEL_OK")
</pallas_src>

<mosaic_0001>
module attributes {stable_mosaic.version = 11 : i64} {
  func.func @_ff_kernel(%arg0: i32, %arg1: memref<256x128xf32, #tpu.memory_space<vmem>>, %arg2: memref<128x256xf32, #tpu.memory_space<vmem>>, %arg3: memref<1x256xf32, #tpu.memory_space<vmem>>, %arg4: memref<256x128xf32, #tpu.memory_space<vmem>>, %arg5: memref<1x128xf32, #tpu.memory_space<vmem>>, %arg6: memref<256x128xf32, #tpu.memory_space<vmem>>) attributes {dimension_semantics = [#tpu.dimension_semantics<parallel>], iteration_bounds = array<i64: 2>, scalar_prefetch = 0 : i64, scratch_operands = 0 : i64, tpu.core_type = #tpu.core_type<tc>, window_params = [{transform_indices = @transform_0, window_bounds = array<i64: 256, 128>}, {pipeline_mode = #tpu.pipeline_mode<synchronous>, transform_indices = @transform_1, window_bounds = array<i64: 128, 256>}, {pipeline_mode = #tpu.pipeline_mode<synchronous>, transform_indices = @transform_2, window_bounds = array<i64: 1, 256>}, {pipeline_mode = #tpu.pipeline_mode<synchronous>, transform_indices = @transform_3, window_bounds = array<i64: 256, 128>}, {pipeline_mode = #tpu.pipeline_mode<synchronous>, transform_indices = @transform_4, window_bounds = array<i64: 1, 128>}, {transform_indices = @transform_5, window_bounds = array<i64: 256, 128>}]} {
    %c0 = arith.constant 0 : index
    %c0_0 = arith.constant 0 : index
    %0 = vector.load %arg1[%c0, %c0_0] : memref<256x128xf32, #tpu.memory_space<vmem>>, vector<256x128xf32>
    %c0_1 = arith.constant 0 : index
    %c0_2 = arith.constant 0 : index
    %1 = vector.load %arg2[%c0_1, %c0_2] : memref<128x256xf32, #tpu.memory_space<vmem>>, vector<128x256xf32>
    %cst = arith.constant dense<0.000000e+00> : vector<256x256xf32>
    %2 = tpu.matmul %0, %1, %cst {dimension_numbers = #tpu.dot_dimension_numbers<[1], [0], [0], [1], [0, 0, 1, 1], [], []>} : vector<256x128xf32>, vector<128x256xf32>, vector<256x256xf32> -> vector<256x256xf32>
    %c0_3 = arith.constant 0 : index
    %c0_4 = arith.constant 0 : index
    %3 = vector.load %arg3[%c0_3, %c0_4] : memref<1x256xf32, #tpu.memory_space<vmem>>, vector<1x256xf32>
    %4 = vector.broadcast %3 : vector<1x256xf32> to vector<256x256xf32>
    %5 = arith.addf %2, %4 : vector<256x256xf32>
    %cst_5 = arith.constant 5.000000e-01 : f32
    %6 = vector.broadcast %cst_5 : f32 to vector<256x256xf32>
    %7 = arith.mulf %6, %5 : vector<256x256xf32>
    %8 = arith.mulf %5, %5 : vector<256x256xf32>
    %9 = arith.mulf %8, %5 : vector<256x256xf32>
    %cst_6 = arith.constant 4.471500e-02 : f32
    %10 = vector.broadcast %cst_6 : f32 to vector<256x256xf32>
    %11 = arith.mulf %10, %9 : vector<256x256xf32>
    %12 = arith.addf %5, %11 : vector<256x256xf32>
    %cst_7 = arith.constant 0.797884583 : f32
    %13 = vector.broadcast %cst_7 : f32 to vector<256x256xf32>
    %14 = arith.mulf %13, %12 : vector<256x256xf32>
    %15 = math.tanh %14 : vector<256x256xf32>
    %cst_8 = arith.constant 1.000000e+00 : f32
    %16 = vector.broadcast %cst_8 : f32 to vector<256x256xf32>
    %17 = arith.addf %16, %15 : vector<256x256xf32>
    %18 = arith.mulf %7, %17 : vector<256x256xf32>
    %c0_9 = arith.constant 0 : index
    %c0_10 = arith.constant 0 : index
    %19 = vector.load %arg4[%c0_9, %c0_10] : memref<256x128xf32, #tpu.memory_space<vmem>>, vector<256x128xf32>
    %cst_11 = arith.constant dense<0.000000e+00> : vector<256x128xf32>
    %20 = tpu.matmul %18, %19, %cst_11 {dimension_numbers = #tpu.dot_dimension_numbers<[1], [0], [0], [1], [0, 0, 1, 1], [], []>} : vector<256x256xf32>, vector<256x128xf32>, vector<256x128xf32> -> vector<256x128xf32>
    %c0_12 = arith.constant 0 : index
    %c0_13 = arith.constant 0 : index
    %21 = vector.load %arg5[%c0_12, %c0_13] : memref<1x128xf32, #tpu.memory_space<vmem>>, vector<1x128xf32>
    %22 = vector.broadcast %21 : vector<1x128xf32> to vector<256x128xf32>
    %23 = arith.addf %20, %22 : vector<256x128xf32>
    %c0_14 = arith.constant 0 : index
    %c0_15 = arith.constant 0 : index
    %24 = vector.load %arg6[%c0_14, %c0_15] : memref<256x128xf32, #tpu.memory_space<vmem>>, vector<256x128xf32>
    tpu.vector_store %arg6[%c0_14, %c0_15], %23 {strides = array<i32>} : memref<256x128xf32, #tpu.memory_space<vmem>>, vector<256x128xf32>,
    return
  }
  func.func @transform_0(%arg0: i32) -> (i32, i32) {
    %c0_i32 = arith.constant 0 : i32
    %c0_i32_0 = arith.constant 0 : i32
    return %arg0, %c0_i32 : i32, i32
  }
  func.func @transform_1(%arg0: i32) -> (i32, i32) {
    %c0_i32 = arith.constant 0 : i32
    %c0_i32_0 = arith.constant 0 : i32
    %c0_i32_1 = arith.constant 0 : i32
    return %c0_i32, %c0_i32_0 : i32, i32
  }
  func.func @transform_2(%arg0: i32) -> (i32, i32) {
    %c0_i32 = arith.constant 0 : i32
    %c0_i32_0 = arith.constant 0 : i32
    %c0_i32_1 = arith.constant 0 : i32
    return %c0_i32, %c0_i32_0 : i32, i32
  }
  func.func @transform_3(%arg0: i32) -> (i32, i32) {
    %c0_i32 = arith.constant 0 : i32
    %c0_i32_0 = arith.constant 0 : i32
    %c0_i32_1 = arith.constant 0 : i32
    return %c0_i32, %c0_i32_0 : i32, i32
  }
  func.func @transform_4(%arg0: i32) -> (i32, i32) {
    %c0_i32 = arith.constant 0 : i32
    %c0_i32_0 = arith.constant 0 : i32
    %c0_i32_1 = arith.constant 0 : i32
    return %c0_i32, %c0_i32_0 : i32, i32
  }
  func.func @transform_5(%arg0: i32) -> (i32, i32) {
    %c0_i32 = arith.constant 0 : i32
    %c0_i32_0 = arith.constant 0 : i32
    return %arg0, %c0_i32 : i32, i32
  }
}

</mosaic_0001>

<bundles_post_ra>
// kernel: tpu_custom_call.1
= control target key start
LH: loop header
LB: loop body
LE: loop exit
PB: predicated region body
PF: predicated region fallthrough
CT: control target
= control target key end

     0   :  { %10 = vsyncpa [#allocation3], 0  ;;  %s3195_s0 = inlined_call_operand.hbm [shape: f32[512,128], index: 0, kind: input, shape index: {}]   ;;  %s3196_s1 = inlined_call_operand.hbm [shape: f32[128,256], index: 1, kind: input, shape index: {}]   ;;  %s3197_s2 = inlined_call_operand.vmem [shape: f32[1,256], index: 2, kind: input, shape index: {}]   ;;  %s3198_s3 = inlined_call_operand.hbm [shape: f32[256,128], index: 3, kind: input, shape index: {}]   ;;  %s3199_s4 = inlined_call_operand.vmem [shape: f32[1,128], index: 4, kind: input, shape index: {}]   ;;  %s3200_s5 = inlined_call_operand.hbm [shape: f32[512,128], index: 5, kind: output, shape index: {}]  }
   0x1   :  { %12 = vsyncpa [#allocation3 + $0x1], 0 }
   0x2   :  { %13 = vsyncpa [#allocation6], 0 }
   0x3   :  { %14 = vsyncpa [#allocation4], 0 }
   0x4   :  { %16 = vsyncpa [#allocation4 + $0x1], 0  ;;  %s2121_s18 = smov 0   ;;  %s2123_s19 = smov 0  }
   0x5   :  { %s2125_s20 = smov 0   ;;  %s2127_s21 = smov 0  }
   0x6 LB: > { %s2142_s22 = sadd.s32 4294967295, %s2077_s21   ;;  %s1585_s23 = sadd.s32 4294967294, %s2077_s21   ;;  %s2077_s21 = sphi %s2127_s21, %s3220_s21   ;;  %s2073_s20 = sphi %s2125_s20, %s3219_s20   ;;  %s2069_s19 = sphi %s2123_s19, %s3218_s19   ;;  %s2065_s18 = sphi %s2121_s18, %s3217_s18  }
   0x7   : > { %p42_p0 = scmp.ne.s32.totalorder %s2069_s19, %s2065_s18  ;;  %p3201_p1 = scmp.eq.s32.totalorder %s2142_s22, 0 }
   0x8   : > { %p156_p3 = scmp.eq.s32.totalorder %s1585_s23, 1  ;;  %p1586_p5 = scmp.ge.s32.totalorder %s2077_s21, 1 }
   0x9   : > { %p2151_p4 = por %p3201_p1, %p42_p0  ;;  %p163_p7 = scmp.lt.s32.totalorder %s2077_s21, 3 }
   0xa   : > { %p2156_p6 = por %p156_p3, %p42_p0  ;;  %s2079_s27 = smov [#allocation5]  }
   0xb   : > { %s3204_s24 = scalar_select %p2151_p4, 1, 0 }
   0xc   : > { %s3205_s25 = scalar_select %p2156_p6, 1, 0 }
   0xd   : > { %p2161_p8 = pnand %p1586_p5, %p163_p7  ;;  %s175_s28 = sshll.u32 %s2079_s27, 4  ;;  %s2165_s28 = int_to_ptr.vmem [resolvable:$true] %s175_s28 }
   0xe   : > { %s2080_s30 = smov [#allocation7]   ;;  %s1921_s9 = scalar_lea.hbm %s3196_s1, 4096 }
   0xf   : > { %p1730_p9 = pneg %p2161_p8  ;;  %s191_s6 = sshll.u32 %s2080_s30, 4  ;;  %s2176_s6 = int_to_ptr.vmem [resolvable:$true] %s191_s6 }
  0x10   : > { %p1922_p12 = scmp.ne.s32.totalorder %s3196_s1, %s1921_s9  ;;  %p1928_p5 = scmp.lt.u32.totalorder %s1921_s9, %s3196_s1 }
  0x11   : > { %p2172_p11 = pnand %p1730_p9, %p3201_p1 }
  0x13   : > { %p1923_p13 = pneg %p2172_p11 }
  0x15   : > { %p1924_p0 = pnand %p1923_p13, %p1922_p12 }
  0x17   : > { %p1925_p3 = pneg %p1924_p0 }
  0x19   : > { %p1930_p7 = pnand %p1928_p5, %p1925_p3 }
  0x1b   : > { %1933 = shalt.err (!%p1930_p7)
}
  0x1c   : > { %s1934_s14 = scalar_lea.vmem %s2165_s28, 4096  ;;  %p1942_p2 = scmp.lt.s32.totalorder %s2165_s28, %s2165_s28 }
  0x1d   : > { %p1935_p9 = scmp.ne.s32.totalorder %s2165_s28, %s1934_s14  ;;  %p1943_p12 = scmp.lt.s32.totalorder %s1934_s14, %s1934_s14 }
  0x1f   : > { %p1937_p10 = pnand %p1935_p9, %p1923_p13  ;;  %p1944_p0 = por %p1943_p12, %p1942_p2 }
  0x21   : > { %p1938_p1 = pneg %p1937_p10 }
  0x23   : > { %p1945_p6 = pnand %p1944_p0, %p1938_p1 }
  0x25   : > { %1948 = shalt.err (!%p1945_p6)
}
  0x26   : > { %s2081_s15 = smov 256   ;;  %s2082_s16 = smov 16  }
  0x27   : > { %1733 = dma.hbm_to_vmem [thread:$0]  (!%p2172_p11), %s3196_s1, 4096, %s2165_s28, [#allocation6], %s2081_s15, %s2081_s15, %s2082_s16  }
  0x28   : > { %s1949_s7 = scalar_lea.hbm %s3198_s3, 4096 }
  0x29   : > { %p1950_p2 = scmp.ne.s32.totalorder %s3198_s3, %s1949_s7  ;;  %p1956_p10 = scmp.lt.u32.totalorder %s1949_s7, %s3198_s3 }
  0x2b   : > { %p1952_p1 = pnand %p1950_p2, %p1923_p13 }
  0x2d   : > { %p1953_p6 = pneg %p1952_p1 }
  0x2f   : > { %p1958_p3 = pnand %p1956_p10, %p1953_p6 }
  0x31   : > { %1961 = shalt.err (!%p1958_p3)
}
  0x32   : > { %s1962_s28 = scalar_lea.vmem %s2176_s6, 4096  ;;  %p1970_p12 = scmp.lt.s32.totalorder %s2176_s6, %s2176_s6 }
  0x33   : > { %p1963_p5 = scmp.ne.s32.totalorder %s2176_s6, %s1962_s28  ;;  %p1971_p0 = scmp.lt.s32.totalorder %s1962_s28, %s1962_s28 }
  0x35   : > { %p1965_p7 = pnand %p1963_p5, %p1923_p13  ;;  %p1972_p2 = por %p1971_p0, %p1970_p12 }
  0x37   : > { %p1966_p9 = pneg %p1965_p7 }
  0x39   : > { %p1973_p1 = pnand %p1972_p2, %p1966_p9 }
  0x3b   : > { %1976 = shalt.err (!%p1973_p1)
}
  0x3c   : > { %s2083_s12 = smov 128   ;;  %s2084_s13 = smov 8  }
  0x3d   : > { %1736 = dma.hbm_to_vmem [thread:$0]  (!%p2172_p11), %s3198_s3, 4096, %s2176_s6, [#allocation6], %s2083_s12, %s2083_s12, %s2084_s13  }
  0x3e   : > { %s2234_s16 = sadd.s32 1, %s2077_s21   ;;  %s29_s23 = sadd.s32 1, %s2073_s20 }
  0x3f   : > { %s26_s17 = ssub.s32 %s2077_s21, %s2234_s16  ;;  %p36_p6 = scmp.ne.s32.totalorder %s2073_s20, %s2069_s19 }
  0x40   : > { %p27_p13 = scmp.eq.s32.totalorder %s26_s17, 0  ;;  %p37_p10 = scmp.eq.s32.totalorder %s2077_s21, 0 }
  0x41   : > { %p3208_p5 = scmp.eq.s32.totalorder %s2142_s22, 1  ;;  %p1747_p9 = scmp.lt.s32.totalorder %s2077_s21, 2 }
  0x42   : > { %s2243_s27 = scalar_select %p27_p13, %s2073_s20, %s29_s23  }
  0x43   : > { %p38_p3 = por %p37_p10, %p36_p6  ;;  %p2247_p7 = por %p3208_p5, %p36_p6 }
  0x44   : > { %s208_s30 = sand.u32 1, %s2073_s20   ;;  %s1604_s6 = sshll.u32 %s2077_s21, 12 }
  0x45   : > { %s3209_s29 = scalar_select %p2247_p7, 1, 0 }
  0x46   : > { %s1590_s7 = sshll.u32 %s208_s30, 8  ;;  %s2257_s10 = scalar_lea.hbm %s3195_s0, %s1604_s6 }
  0x47   : > { %s212_s11 = scalar_lea.vmem [#allocation2], %s1590_s7  ;;  %p2261_p11 = pnand %p1747_p9, %p38_p3 }
  0x48   : > { %s219_s28 = sshll.u32 %s212_s11, 4  ;;  %s2265_s15 = scalar_lea.sflag [#allocation3], %s208_s30  ;;  %s2259_s28 = int_to_ptr.vmem [resolvable:$true] %s219_s28 }
  0x49   : > { %s1977_s17 = scalar_lea.hbm %s2257_s10, 4096  ;;  %p1979_p0 = pneg %p2261_p11 }
  0x4a   : > { %p1978_p12 = scmp.ne.s32.totalorder %s2257_s10, %s1977_s17  ;;  %s1982_s6 = scalar_lea.hbm %s3195_s0, 8192 }
  0x4b   : > { %p1983_p13 = scmp.lt.u32.totalorder %s2257_s10, %s3195_s0  ;;  %p1984_p6 = scmp.lt.u32.totalorder %s1982_s6, %s1977_s17 }
  0x4c   : > { %p1980_p2 = pnand %p1979_p0, %p1978_p12  ;;  %p1986_p3 = scmp.lt.u32.totalorder %s1977_s17, %s2257_s10 }
  0x4d   : > { %p1985_p10 = por %p1984_p6, %p1983_p13 }
  0x4e   : > { %p1981_p1 = pneg %p1980_p2 }
  0x4f   : > { %p1987_p5 = por %p1986_p3, %p1985_p10 }
  0x51   : > { %p1988_p9 = pnand %p1987_p5, %p1981_p1 }
  0x53   : > { %1991 = shalt.err (!%p1988_p9)
}
  0x54   : > { %s1992_s30 = scalar_lea.vmem %s2259_s28, 4096  ;;  %s2085_s11 = smov [#allocation2]  }
  0x55   : > { %p1993_p12 = scmp.ne.s32.totalorder %s2259_s28, %s1992_s30  ;;  %s1997_s23 = sshll.u32 %s2085_s11, 4  ;;  %s1998_s23 = int_to_ptr.vmem [resolvable:$false] %s1997_s23 }
  0x56   : > { %s1999_s7 = scalar_lea.vmem %s1998_s23, 8192  ;;  %p2000_p4 = scmp.lt.s32.totalorder %s2259_s28, %s1998_s23 }
  0x57   : > { %p1995_p2 = pnand %p1993_p12, %p1979_p0  ;;  %p2001_p13 = scmp.lt.s32.totalorder %s1999_s7, %s1992_s30 }
  0x59   : > { %p1996_p7 = pneg %p1995_p2  ;;  %p2002_p6 = por %p2001_p13, %p2000_p4 }
  0x5b   : > { %p2003_p10 = pnand %p2002_p6, %p1996_p7 }
  0x5d   : > { %2006 = shalt.err (!%p2003_p10)
}
  0x5e   : > { %1740 = dma.hbm_to_vmem [thread:$0]  (!%p2261_p11), %s2257_s10, 4096, %s2259_s28, %s2265_s15, %s2083_s12, %s2083_s12, %s2084_s13  }
  0x5f   : > { %231 = sbr.rel (%p2161_p8) target bundleno = 766 (0x2fe), region = 40  ;;  %s2299_s17 = sand.u32 (!%p2161_p8), 1, %s2069_s19  }
  0x60   : > { %s1594_s6 = sshll.u32 (!%p2161_p8), %s2299_s17, 8  ;;  %s234_s8 = scalar_lea.sflag (!%p2161_p8), [#allocation3], %s2299_s17 }
  0x61   : > { %s2305_s14 = scalar_lea.vmem (!%p2161_p8), [#allocation2], %s1594_s6  ;;  %p3211_p4 = scmp.ne.s32.totalorder (!%p2161_p8), %s3204_s24, 0 }
  0x66   : > { %2052 = dma.done.wait (%p3211_p4), %s234_s8, 4096  }
  0x67   : > { %2054 = vsyncadd (%p3211_p4), %s234_s8, 4294963200  ;;  %p3212_p7 = scmp.eq.s32.totalorder %s2142_s22, 0 }
  0x69   : > { %2056 = dma.done.wait (%p3212_p7), [#allocation6], 8192   ;;  %p3213_p8 = pmov %p3212_p7 }
  0x6a   : > { %v2086_v0 = vmov 0.0   ;;  %v307_v1 = vld [vmem:[#allocation5 + $0x8] sm:$0xff]  ;;  %v309_v2 = vld [vmem:[#allocation5 + $0x18] sm:$0xff]  ;;  %v306_v3 = vld [vmem:[#allocation5] sm:$0xff]  ;;  %v2087_v53 = vmov 0.0|0.0   ;;  %s3079_s10 = scalar_lea.vmem [#allocation8], %s1594_s6 }
  0x6b   : > { %2058 = vsyncadd (%p3213_p8), [#allocation6], 4294959104  ;;  %414 = vmatprep.mubr.f32.mxu0 %v2086_v0  ;;  %v1606_v4 = vpack.c.bf16 %v309_v2, %v307_v1  ;;  %v308_v5 = vld [vmem:[#allocation5 + $0x10] sm:$0xff]  ;;  %v311_v6 = vld [vmem:[#allocation5 + $0x28] sm:$0xff]  ;;  %1686 = vmatprep.subr.bf16.mxu1 %v2087_v53  ;;  %s1605_s28 = sshll.u32 %s2142_s22, 12  ;;  %s1493_s15 = sshll.u32 %s3079_s10, 4  ;;  %s3149_s15 = int_to_ptr.vmem [resolvable:$true] %s1493_s15 }
  0x6c   : > { %v313_v7 = vld [vmem:[#allocation5 + $0x38] sm:$0xff]  ;;  %v1608_v8 = vpack.c.bf16 %v308_v5, %v306_v3  ;;  %v310_v10 = vld [vmem:[#allocation5 + $0x20] sm:$0xff]  ;;  %v312_v11 = vld [vmem:[#allocation5 + $0x30] sm:$0xff]  ;;  %s3147_s11 = scalar_lea.hbm %s3200_s5, %s1605_s28  ;;  %s1480_s23 = scalar_lea.sflag [#allocation4], %s2299_s17 }
  0x6d   : > { %v1610_v9 = vpack.c.bf16 %v313_v7, %v311_v6  ;;  %v315_v12 = vld [vmem:[#allocation5 + $0x48] sm:$0xff]  ;;  %1607 = vmatprep.subr.bf16.mxu0 %v1606_v4  ;;  %v317_v13 = vld [vmem:[#allocation5 + $0x58] sm:$0xff]  ;;  %v1612_v14 = vpack.c.bf16 %v312_v11, %v310_v10  ;;  %v314_v16 = vld [vmem:[#allocation5 + $0x40] sm:$0xff]  ;;  %s2007_s7 = scalar_lea.vmem %s3149_s15, 4096  ;;  %p3214_p0 = scmp.ne.s32.totalorder %s3209_s29, 0 }
  0x6e   : > { %1609 = vmatpush1.bf16.msra.mxu0 %v1608_v8  ;;  %v1614_v15 = vpack.c.bf16 %v317_v13, %v315_v12  ;;  %v316_v17 = vld [vmem:[#allocation5 + $0x50] sm:$0xff]  ;;  %v319_v18 = vld [vmem:[#allocation5 + $0x68] sm:$0xff]  ;;  %v321_v19 = vld [vmem:[#allocation5 + $0x78] sm:$0xff]  ;;  %p2008_p11 = scmp.ne.s32.totalorder %s3149_s15, %s2007_s7  ;;  %s2088_s22 = smov [#allocation8]  }
  0x6f   : > { %1611 = vmatprep.subr.bf16.mxu0 %v1610_v9  ;;  %v1616_v20 = vpack.c.bf16 %v316_v17, %v314_v16  ;;  %v1618_v21 = vpack.c.bf16 %v321_v19, %v319_v18  ;;  %v318_v22 = vld [vmem:[#allocation5 + $0x60] sm:$0xff]  ;;  %v320_v23 = vld [vmem:[#allocation5 + $0x70] sm:$0xff]  ;;  %v323_v24 = vld [vmem:[#allocation5 + $0x88] sm:$0xff]  ;;  %s2011_s6 = sshll.u32 %s2088_s22, 4  ;;  %s2012_s6 = int_to_ptr.vmem [resolvable:$false] %s2011_s6 }
  0x70   : > { %v325_v25 = vld [vmem:[#allocation5 + $0x98] sm:$0xff]  ;;  %v1620_v26 = vpack.c.bf16 %v320_v23, %v318_v22  ;;  %v322_v28 = vld [vmem:[#allocation5 + $0x80] sm:$0xff]  ;;  %v324_v29 = vld [vmem:[#allocation5 + $0x90] sm:$0xff]  ;;  %p2009_p1 = pnand %p2008_p11, %p3214_p0  ;;  %s2013_s8 = scalar_lea.vmem %s2012_s6, 8192 }
  0x71   : > { %v1622_v27 = vpack.c.bf16 %v325_v25, %v323_v24  ;;  %v327_v30 = vld [vmem:[#allocation5 + $0xa8] sm:$0xff]  ;;  %v329_v31 = vld [vmem:[#allocation5 + $0xb8] sm:$0xff]  ;;  %v1624_v32 = vpack.c.bf16 %v324_v29, %v322_v28  ;;  %v326_v34 = vld [vmem:[#allocation5 + $0xa0] sm:$0xff]  ;;  %p2014_p5 = scmp.lt.s32.totalorder %s3149_s15, %s2012_s6  ;;  %p2015_p9 = scmp.lt.s32.totalorder %s2013_s8, %s2007_s7 }
  0x72   : > { %1613 = vmatpush1.bf16.msra.mxu0 %v1612_v14  ;;  %v1626_v33 = vpack.c.bf16 %v329_v31, %v327_v30  ;;  %v328_v35 = vld [vmem:[#allocation5 + $0xb0] sm:$0xff]  ;;  %v331_v36 = vld [vmem:[#allocation5 + $0xc8] sm:$0xff]  ;;  %v333_v37 = vld [vmem:[#allocation5 + $0xd8] sm:$0xff]  ;;  %p2010_p3 = pneg %p2009_p1 }
  0x73   : > { %1615 = vmatprep.subr.bf16.mxu0 %v1614_v15  ;;  %v1628_v38 = vpack.c.bf16 %v328_v35, %v326_v34  ;;  %v1630_v39 = vpack.c.bf16 %v333_v37, %v331_v36  ;;  %v330_v40 = vld [vmem:[#allocation5 + $0xc0] sm:$0xff]  ;;  %v332_v41 = vld [vmem:[#allocation5 + $0xd0] sm:$0xff]  ;;  %v335_v42 = vld [vmem:[#allocation5 + $0xe8] sm:$0xff]  ;;  %p2016_p12 = por %p2015_p9, %p2014_p5 }
  0x74   : > { %v337_v43 = vld [vmem:[#allocation5 + $0xf8] sm:$0xff]  ;;  %v1632_v44 = vpack.c.bf16 %v332_v41, %v330_v40  ;;  %v334_v46 = vld [vmem:[#allocation5 + $0xe0] sm:$0xff]  ;;  %v336_v47 = vld [vmem:[#allocation5 + $0xf0] sm:$0xff] }
  0x75   : > { %v1634_v45 = vpack.c.bf16 %v337_v43, %v335_v42  ;;  %v1636_v48 = vpack.c.bf16 %v336_v47, %v334_v46  ;;  %v1183_v49 = vld [vmem:[#allocation7] sm:$0xff]  ;;  %v1184_v50 = vld [vmem:[#allocation7 + $0x8] sm:$0xff]  ;;  %v1185_v54 = vld [vmem:[#allocation7 + $0x10] sm:$0xff]  ;;  %p2017_p2 = pnand %p2016_p12, %p2010_p3 }
  0x76   : > { %1617 = vmatpush1.bf16.msra.mxu0 %v1616_v20  ;;  %v274_v51 = vld [vmem:[%s2305_s14] sm:$0xff]  ;;  %v1639_v52 = vpack.c.bf16 %v1184_v50, %v1183_v49  ;;  %v1186_v55 = vld [vmem:[#allocation7 + $0x18] sm:$0xff]  ;;  %v275_v56 = vld [vmem:[%s2305_s14 + $0x8] sm:$0xff] }
  0x77   : > { %1619 = vmatprep.subr.bf16.mxu0 %v1618_v21  ;;  %v1642_v57 = vpack.c.bf16 %v1186_v55, %v1185_v54  ;;  %v1187_v58 = vld [vmem:[#allocation7 + $0x20] sm:$0xff]  ;;  %v1188_v59 = vld [vmem:[#allocation7 + $0x28] sm:$0xff]  ;;  %v276_v60 = vld [vmem:[%s2305_s14 + $0x10] sm:$0xff] }
  0x78   : > { %1702 = vmatpush1.bf16.msra.mxu1 %v1639_v52  ;;  %v1645_v61 = vpack.c.bf16 %v1188_v59, %v1187_v58  ;;  %v1189_v62 = vld [vmem:[#allocation7 + $0x30] sm:$0xff]  ;;  %v1190_v63 = vld [vmem:[#allocation7 + $0x38] sm:$0xff]  ;;  %v1191_v3 = vld [vmem:[#allocation7 + $0x40] sm:$0xff] }
  0x79   : > { %1687 = vmatprep.subr.bf16.mxu1 %v2087_v53  ;;  %v277_v1 = vld [vmem:[%s2305_s14 + $0x18] sm:$0xff]  ;;  %v1648_v2 = vpack.c.bf16 %v1190_v63, %v1189_v62  ;;  %v1192_v4 = vld [vmem:[#allocation7 + $0x48] sm:$0xff]  ;;  %v278_v5 = vld [vmem:[%s2305_s14 + $0x20] sm:$0xff] }
  0x7a   : > { %1621 = vmatpush1.bf16.msra.mxu0 %v1620_v26  ;;  %v1651_v6 = vpack.c.bf16 %v1192_v4, %v1191_v3  ;;  %v1193_v7 = vld [vmem:[#allocation7 + $0x50] sm:$0xff]  ;;  %v1194_v8 = vld [vmem:[#allocation7 + $0x58] sm:$0xff]  ;;  %v279_v9 = vld [vmem:[%s2305_s14 + $0x28] sm:$0xff] }
  0x7b   : > { %1623 = vmatprep.subr.bf16.mxu0 %v1622_v27  ;;  %v1654_v10 = vpack.c.bf16 %v1194_v8, %v1193_v7  ;;  %v1195_v11 = vld [vmem:[#allocation7 + $0x60] sm:$0xff]  ;;  %v1196_v12 = vld [vmem:[#allocation7 + $0x68] sm:$0xff]  ;;  %v280_v13 = vld [vmem:[%s2305_s14 + $0x30] sm:$0xff] }
  0x7c   : > { %1703 = vmatpush1.bf16.msra.mxu1 %v1642_v57  ;;  %v1657_v14 = vpack.c.bf16 %v1196_v12, %v1195_v11  ;;  %v1197_v15 = vld [vmem:[#allocation7 + $0x70] sm:$0xff]  ;;  %v1198_v16 = vld [vmem:[#allocation7 + $0x78] sm:$0xff]  ;;  %v1199_v19 = vld [vmem:[#allocation7 + $0x80] sm:$0xff] }
  0x7d   : > { %1688 = vmatprep.subr.bf16.mxu1 %v2087_v53  ;;  %v281_v17 = vld [vmem:[%s2305_s14 + $0x38] sm:$0xff]  ;;  %v1660_v18 = vpack.c.bf16 %v1198_v16, %v1197_v15  ;;  %v1200_v20 = vld [vmem:[#allocation7 + $0x88] sm:$0xff]  ;;  %v282_v21 = vld [vmem:[%s2305_s14 + $0x40] sm:$0xff] }
  0x7e   : > { %1625 = vmatpush1.bf16.msra.mxu0 %v1624_v32  ;;  %v1663_v22 = vpack.c.bf16 %v1200_v20, %v1199_v19  ;;  %v283_v23 = vld [vmem:[%s2305_s14 + $0x48] sm:$0xff]  ;;  %v284_v24 = vld [vmem:[%s2305_s14 + $0x50] sm:$0xff]  ;;  %v285_v25 = vld [vmem:[%s2305_s14 + $0x58] sm:$0xff] }
  0x7f   : > { %1627 = vmatprep.subr.bf16.mxu0 %v1626_v33  ;;  %v286_v26 = vld [vmem:[%s2305_s14 + $0x60] sm:$0xff]  ;;  %v287_v27 = vld [vmem:[%s2305_s14 + $0x68] sm:$0xff]  ;;  %v288_v28 = vld [vmem:[%s2305_s14 + $0x70] sm:$0xff] }
  0x80   : > { %1704 = vmatpush1.bf16.msra.mxu1 %v1645_v61  ;;  %v289_v29 = vld [vmem:[%s2305_s14 + $0x78] sm:$0xff]  ;;  %v290_v30 = vld [vmem:[%s2305_s14 + $0x80] sm:$0xff]  ;;  %v291_v31 = vld [vmem:[%s2305_s14 + $0x88] sm:$0xff] }
  0x81   : > { %1689 = vmatprep.subr.bf16.mxu1 %v2087_v53  ;;  %v292_v32 = vld [vmem:[%s2305_s14 + $0x90] sm:$0xff]  ;;  %v293_v33 = vld [vmem:[%s2305_s14 + $0x98] sm:$0xff]  ;;  %v294_v34 = vld [vmem:[%s2305_s14 + $0xa0] sm:$0xff] }
  0x82   : > { %1629 = vmatpush1.bf16.msra.mxu0 %v1628_v38  ;;  %v295_v35 = vld [vmem:[%s2305_s14 + $0xa8] sm:$0xff]  ;;  %v1201_v36 = vld [vmem:[#allocation7 + $0x90] sm:$0xff]  ;;  %v1202_v37 = vld [vmem:[#allocation7 + $0x98] sm:$0xff] }
  0x83   : > { %1631 = vmatprep.subr.bf16.mxu0 %v1630_v39  ;;  %v1666_v38 = vpack.c.bf16 %v1202_v37, %v1201_v36  ;;  %v296_v39 = vld [vmem:[%s2305_s14 + $0xb0] sm:$0xff]  ;;  %v1203_v40 = vld [vmem:[#allocation7 + $0xa0] sm:$0xff]  ;;  %v1204_v41 = vld [vmem:[#allocation7 + $0xa8] sm:$0xff] }
  0x84   : > { %1705 = vmatpush1.bf16.msra.mxu1 %v1648_v2  ;;  %v1669_v42 = vpack.c.bf16 %v1204_v41, %v1203_v40  ;;  %v297_v43 = vld [vmem:[%s2305_s14 + $0xb8] sm:$0xff]  ;;  %v298_v47 = vld [vmem:[%s2305_s14 + $0xc0] sm:$0xff]  ;;  %v1208_v49 = vld [vmem:[#allocation7 + $0xc8] sm:$0xff] }
  0x85   : > { %1690 = vmatprep.subr.bf16.mxu1 %v2087_v53  ;;  %v1210_v54 = vld [vmem:[#allocation7 + $0xd8] sm:$0xff]  ;;  %v1212_v58 = vld [vmem:[#allocation7 + $0xe8] sm:$0xff]  ;;  %v304_v3 = vld [vmem:[%s2305_s14 + $0xf0] sm:$0xff] }
  0x86   : > { %1633 = vmatpush1.bf16.msra.mxu0 %v1632_v44  ;;  %v1205_v44 = vld [vmem:[#allocation7 + $0xb0] sm:$0xff]  ;;  %v1214_v62 = vld [vmem:[#allocation7 + $0xf8] sm:$0xff]  ;;  %v338_v7 = vld [vmem:[%s3197_s2] sm:$0x3] }
  0x87   : > { %1635 = vmatprep.subr.bf16.mxu0 %v1634_v45  ;;  %v1206_v45 = vld [vmem:[#allocation7 + $0xb8] sm:$0xff] }
  0x88   : > { %1706 = vmatpush1.bf16.msra.mxu1 %v1651_v6  ;;  %v1672_v46 = vpack.c.bf16 %v1206_v45, %v1205_v44  ;;  %v305_v4 = vld [vmem:[%s2305_s14 + $0xf8] sm:$0xff] }
  0x89   : > { %1691 = vmatprep.subr.bf16.mxu1 %v2087_v53 }
  0x8a   : > { %1637 = vmatpush1.bf16.msra.mxu0 %v1636_v48  ;;  %v1207_v48 = vld [vmem:[#allocation7 + $0xc0] sm:$0xff] }
  0x8b   : > { %1638 = vmatprep.subr.bf16.mxu0 %v2087_v53  ;;  %v1675_v50 = vpack.c.bf16 %v1208_v49, %v1207_v48 }
  0x8c   : > { %1707 = vmatpush1.bf16.msra.mxu1 %v1654_v10 }
  0x8d   : > { %415 = vmatmul.mubr.f32.vlgmr.msra.gmra.mrb[0].mxu0 %v274_v51  ;;  %1692 = vmatprep.subr.bf16.mxu1 %v2087_v53  ;;  %v299_v51 = vld [vmem:[%s2305_s14 + $0xc8] sm:$0xff] }
  0x8e   : > { %420 = vmatprep.mubr.f32.mxu0 %v2086_v0  ;;  %1640 = vmatpush1.bf16.msra.mxu0 %v1639_v52  ;;  %v1209_v52 = vld [vmem:[#allocation7 + $0xd0] sm:$0xff] }
  0x8f   : > { %1641 = vmatprep.subr.bf16.mxu0 %v2087_v53  ;;  %v1678_v55 = vpack.c.bf16 %v1210_v54, %v1209_v52 }
  0x90   : > { %1708 = vmatpush1.bf16.msra.mxu1 %v1657_v14 }
  0x91   : > { %421 = vmatmul.mubr.f32.gmra.mrb[2].mxu0 %v275_v56  ;;  %1693 = vmatprep.subr.bf16.mxu1 %v2087_v53  ;;  %v300_v56 = vld [vmem:[%s2305_s14 + $0xd0] sm:$0xff] }
  0x92   : > { %426 = vmatprep.mubr.f32.mxu0 %v2086_v0  ;;  %1643 = vmatpush1.bf16.msra.mxu0 %v1642_v57  ;;  %v1211_v57 = vld [vmem:[#allocation7 + $0xe0] sm:$0xff] }
  0x93   : > { %1644 = vmatprep.subr.bf16.mxu0 %v2087_v53  ;;  %v1681_v59 = vpack.c.bf16 %v1212_v58, %v1211_v57 }
  0x94   : > { %1709 = vmatpush1.bf16.msra.mxu1 %v1660_v18 }
  0x95   : > { %427 = vmatmul.mubr.f32.gmra.mrb[4].mxu0 %v276_v60  ;;  %1694 = vmatprep.subr.bf16.mxu1 %v2087_v53  ;;  %v301_v60 = vld [vmem:[%s2305_s14 + $0xd8] sm:$0xff] }
  0x96   : > { %432 = vmatprep.mubr.f32.mxu0 %v2086_v0  ;;  %1646 = vmatpush1.bf16.msra.mxu0 %v1645_v61  ;;  %v1213_v61 = vld [vmem:[#allocation7 + $0xf0] sm:$0xff] }
  0x97   : > { %1647 = vmatprep.subr.bf16.mxu0 %v2087_v53  ;;  %v1684_v63 = vpack.c.bf16 %v1214_v62, %v1213_v61 }
  0x98   : > { %1710 = vmatpush1.bf16.msra.mxu1 %v1663_v22 }
  0x99   : > { %433 = vmatmul.mubr.f32.gmra.mrb[6].mxu0 %v277_v1  ;;  %1695 = vmatprep.subr.bf16.mxu1 %v2087_v53  ;;  %v302_v1 = vld [vmem:[%s2305_s14 + $0xe0] sm:$0xff] }
  0x9a   : > { %438 = vmatprep.mubr.f32.mxu0 %v2086_v0  ;;  %1649 = vmatpush1.bf16.msra.mxu0 %v1648_v2  ;;  %v303_v2 = vld [vmem:[%s2305_s14 + $0xe8] sm:$0xff] }
  0x9b   : > { %1650 = vmatprep.subr.bf16.mxu0 %v2087_v53 }
  0x9c   : > { %1711 = vmatpush1.bf16.msra.mxu1 %v1666_v38 }
  0x9d   : > { %439 = vmatmul.mubr.f32.gmra.mrb[8].mxu0 %v278_v5  ;;  %1696 = vmatprep.subr.bf16.mxu1 %v2087_v53 }
  0x9e   : > { %444 = vmatprep.mubr.f32.mxu0 %v2086_v0  ;;  %1652 = vmatpush1.bf16.msra.mxu0 %v1651_v6 }
  0x9f   : > { %1653 = vmatprep.subr.bf16.mxu0 %v2087_v53 }
  0xa0   : > { %1712 = vmatpush1.bf16.msra.mxu1 %v1669_v42 }
  0xa1   : > { %445 = vmatmul.mubr.f32.gmra.mrb[10].mxu0 %v279_v9  ;;  %1697 = vmatprep.subr.bf16.mxu1 %v2087_v53 }
  0xa2   : > { %450 = vmatprep.mubr.f32.mxu0 %v2086_v0  ;;  %1655 = vmatpush1.bf16.msra.mxu0 %v1654_v10 }
  0xa3   : > { %1656 = vmatprep.subr.bf16.mxu0 %v2087_v53 }
  0xa4   : > { %1713 = vmatpush1.bf16.msra.mxu1 %v1672_v46 }
  0xa5   : > { %451 = vmatmul.mubr.f32.gmra.mrb[12].mxu0 %v280_v13  ;;  %1698 = vmatprep.subr.bf16.mxu1 %v2087_v53 }
  0xa6   : > { %456 = vmatprep.mubr.f32.mxu0 %v2086_v0  ;;  %1658 = vmatpush1.bf16.msra.mxu0 %v1657_v14 }
  0xa7   : > { %1659 = vmatprep.subr.bf16.mxu0 %v2087_v53 }
  0xa8   : > { %1714 = vmatpush1.bf16.msra.mxu1 %v1675_v50 }
  0xa9   : > { %457 = vmatmul.mubr.f32.gmra.mrb[14].mxu0 %v281_v17  ;;  %1699 = vmatprep.subr.bf16.mxu1 %v2087_v53 }
  0xaa   : > { %462 = vmatprep.mubr.f32.mxu0 %v2086_v0  ;;  %1661 = vmatpush1.bf16.msra.mxu0 %v1660_v18 }
  0xab   : > { %1662 = vmatprep.subr.bf16.mxu0 %v2087_v53 }
  0xac   : > { %1715 = vmatpush1.bf16.msra.mxu1 %v1678_v55 }
  0xad   : > { %463 = vmatmul.mubr.f32.gmra.mrb[16].mxu0 %v282_v21  ;;  %1700 = vmatprep.subr.bf16.mxu1 %v2087_v53 }
  0xae   : > { %468 = vmatprep.mubr.f32.mxu0 %v2086_v0  ;;  %1664 = vmatpush1.bf16.msra.mxu0 %v1663_v22 }
  0xaf   : > { %1665 = vmatprep.subr.bf16.mxu0 %v2087_v53 }
  0xb0   : > { %1716 = vmatpush1.bf16.msra.mxu1 %v1681_v59 }
  0xb1   : > { %469 = vmatmul.mubr.f32.gmra.mrb[18].mxu0 %v283_v23  ;;  %1701 = vmatprep.subr.bf16.mxu1 %v2087_v53 }
  0xb2   : > { %474 = vmatprep.mubr.f32.mxu0 %v2086_v0  ;;  %1667 = vmatpush1.bf16.msra.mxu0 %v1666_v38 }
  0xb3   : > { %1668 = vmatprep.subr.bf16.mxu0 %v2087_v53 }
  0xb4   : > { %1717 = vmatpush1.bf16.msra.mxu1 %v1684_v63 }
  0xb5   : > { %475 = vmatmul.mubr.f32.gmra.mrb[20].mxu0 %v284_v24 }
  0xb6   : > { %480 = vmatprep.mubr.f32.mxu0 %v2086_v0  ;;  %1670 = vmatpush1.bf16.msra.mxu0 %v1669_v42 }
  0xb7   : > { %1671 = vmatprep.subr.bf16.mxu0 %v2087_v53 }
  0xb9   : > { %481 = vmatmul.mubr.f32.gmra.mrb[22].mxu0 %v285_v25 }
  0xba   : > { %486 = vmatprep.mubr.f32.mxu0 %v2086_v0  ;;  %1673 = vmatpush1.bf16.msra.mxu0 %v1672_v46 }
  0xbb   : > { %1674 = vmatprep.subr.bf16.mxu0 %v2087_v53 }
  0xbd   : > { %487 = vmatmul.mubr.f32.gmra.mrb[24].mxu0 %v286_v26 }
  0xbe   : > { %492 = vmatprep.mubr.f32.mxu0 %v2086_v0  ;;  %1676 = vmatpush1.bf16.msra.mxu0 %v1675_v50 }
  0xbf   : > { %1677 = vmatprep.subr.bf16.mxu0 %v2087_v53 }
  0xc1   : > { %493 = vmatmul.mubr.f32.gmra.mrb[26].mxu0 %v287_v27 }
  0xc2   : > { %498 = vmatprep.mubr.f32.mxu0 %v2086_v0  ;;  %1679 = vmatpush1.bf16.msra.mxu0 %v1678_v55 }
  0xc3   : > { %1680 = vmatprep.subr.bf16.mxu0 %v2087_v53 }
  0xc5   : > { %499 = vmatmul.mubr.f32.gmra.mrb[28].mxu0 %v288_v28 }
  0xc6   : > { %504 = vmatprep.mubr.f32.mxu0 %v2086_v0  ;;  %1682 = vmatpush1.bf16.msra.mxu0 %v1681_v59 }
  0xc7   : > { %1683 = vmatprep.subr.bf16.mxu0 %v2087_v53  ;;  %v340_v53 = vlaneseq }
  0xc9   : > { %505 = vmatmul.mubr.f32.gmra.mrb[30].mxu0 %v289_v29  ;;  %v341_v5 = vshrl.u32 %v340_v53, 7 }
  0xca   : > { %510 = vmatprep.mubr.f32.mxu0 %v2086_v0  ;;  %1685 = vmatpush1.bf16.msra.mxu0 %v1684_v63 }
  0xcb   : > { %v342_v6 = vsub.s32 0, %v341_v5  ;;  %v346_v8 = vsub.s32 1, %v341_v5 }
  0xcd   : > { %511 = vmatmul.mubr.f32.gmra.mrb[32].mxu0 %v290_v30  ;;  %v2414_v9 = vrot.slane %v338_v7, %v342_v6  ;;  %v2416_v10 = vrot.slane %v338_v7, %v346_v8 }
  0xce   : > { %516 = vmatprep.mubr.f32.mxu0 %v2086_v0 }
  0xd1   : > { %517 = vmatmul.mubr.f32.gmra.mrb[34].mxu0 %v291_v31 }
  0xd2   : > { %522 = vmatprep.mubr.f32.mxu0 %v2086_v0 }
  0xd5   : > { %523 = vmatmul.mubr.f32.gmra.mrb[36].mxu0 %v292_v32 }
  0xd6   : > { %528 = vmatprep.mubr.f32.mxu0 %v2086_v0 }
  0xd9   : > { %529 = vmatmul.mubr.f32.gmra.mrb[38].mxu0 %v293_v33 }
  0xda   : > { %534 = vmatprep.mubr.f32.mxu0 %v2086_v0 }
  0xdd   : > { %535 = vmatmul.mubr.f32.gmra.mrb[40].mxu0 %v294_v34 }
  0xde   : > { %540 = vmatprep.mubr.f32.mxu0 %v2086_v0 }
  0xe1   : > { %541 = vmatmul.mubr.f32.gmra.mrb[42].mxu0 %v295_v35 }
  0xe2   : > { %546 = vmatprep.mubr.f32.mxu0 %v2086_v0 }
  0xe5   : > { %547 = vmatmul.mubr.f32.gmra.mrb[44].mxu0 %v296_v39 }
  0xe6   : > { %552 = vmatprep.mubr.f32.mxu0 %v2086_v0 }
  0xe9   : > { %553 = vmatmul.mubr.f32.gmra.mrb[46].mxu0 %v297_v43 }
  0xea   : > { %558 = vmatprep.mubr.f32.mxu0 %v2086_v0 }
  0xed   : > { %559 = vmatmul.mubr.f32.gmra.mrb[48].mxu0 %v298_v47 }
  0xee   : > { %564 = vmatprep.mubr.f32.mxu0 %v2086_v0 }
  0xf1   : > { %565 = vmatmul.mubr.f32.gmra.mrb[50].mxu0 %v299_v51 }
  0xf2   : > { %570 = vmatprep.mubr.f32.mxu0 %v2086_v0 }
  0xf5   : > { %571 = vmatmul.mubr.f32.gmra.mrb[52].mxu0 %v300_v56 }
  0xf6   : > { %576 = vmatprep.mubr.f32.mxu0 %v2086_v0 }
  0xf9   : > { %577 = vmatmul.mubr.f32.gmra.mrb[54].mxu0 %v301_v60 }
  0xfa   : > { %582 = vmatprep.mubr.f32.mxu0 %v2086_v0 }
  0xfd   : > { %583 = vmatmul.mubr.f32.gmra.mrb[56].mxu0 %v302_v1 }
  0xfe   : > { %588 = vmatprep.mubr.f32.mxu0 %v2086_v0 }
 0x101   : > { %589 = vmatmul.mubr.f32.gmra.mrb[58].mxu0 %v303_v2 }
 0x102   : > { %594 = vmatprep.mubr.f32.mxu0 %v2086_v0 }
 0x105   : > { %595 = vmatmul.mubr.f32.gmra.mrb[60].mxu0 %v304_v3 }
 0x106   : > { %600 = vmatprep.mubr.f32.mxu0 %v2086_v0 }
 0x109   : > { %601 = vmatmul.mubr.f32.gmra.mrb[62].mxu0 %v305_v4 }
 0x160   : > { %v416_v11 = vpop.f32.mrb[0].mxu0 }
 0x161   : > { %v2419_v12 = vadd.f32 %v416_v11, %v2414_v9  ;;  %v418_v13 = vpop.f32.mrb[1].mxu0 }
 0x162   : > { %v2422_v0 = vadd.f32 %v418_v13, %v2416_v10 }
 0x163   : > { %v671_v14 = vmul.f32 %v2419_v12, %v2419_v12 }
 0x164   : > { %v672_v15 = vmul.f32 %v2422_v0, %v2422_v0  ;;  %v422_v16 = vpop.f32.mrb[2].mxu0 }
 0x165   : > { %v735_v17 = vmul.f32 %v671_v14, %v2419_v12  ;;  %v2430_v18 = vadd.f32 %v422_v16, %v2414_v9  ;;  %v424_v19 = vpop.f32.mrb[3].mxu0 }
 0x166   : > { %v736_v20 = vmul.f32 %v672_v15, %v2422_v0  ;;  %v2434_v21 = vadd.f32 %v424_v19, %v2416_v10 }
 0x167   : > { %v799_v22 = vmul.f32 0.044715, %v735_v17  ;;  %v673_v23 = vmul.f32 %v2430_v18, %v2430_v18 }
 0x168   : > { %v800_v24 = vmul.f32 0.044715, %v736_v20  ;;  %v674_v25 = vmul.f32 %v2434_v21, %v2434_v21  ;;  %v428_v26 = vpop.f32.mrb[4].mxu0 }
 0x169   : > { %v863_v27 = vadd.f32 %v799_v22, %v2419_v12  ;;  %v737_v28 = vmul.f32 %v673_v23, %v2430_v18  ;;  %v2443_v29 = vadd.f32 %v428_v26, %v2414_v9  ;;  %v430_v30 = vpop.f32.mrb[5].mxu0 }
 0x16a   : > { %v864_v31 = vadd.f32 %v800_v24, %v2422_v0  ;;  %v738_v32 = vmul.f32 %v674_v25, %v2434_v21  ;;  %v2448_v33 = vadd.f32 %v430_v30, %v2416_v10  ;;  %v607_v24 = vmul.f32 0.5, %v2419_v12 }
 0x16b   : > { %v927_v34 = vmul.f32 0.7978846, %v863_v27  ;;  %v801_v35 = vmul.f32 0.044715, %v737_v28  ;;  %v675_v36 = vmul.f32 %v2443_v29, %v2443_v29  ;;  %v608_v27 = vmul.f32 0.5, %v2422_v0 }
 0x16c   : > { %v928_v37 = vmul.f32 0.7978846, %v864_v31  ;;  %v802_v38 = vmul.f32 0.044715, %v738_v32  ;;  %v676_v39 = vmul.f32 %v2448_v33, %v2448_v33  ;;  %v434_v40 = vpop.f32.mrb[6].mxu0  ;;  %v609_v32 = vmul.f32 0.5, %v2430_v18 }
 0x16d   : > { %1793 = vtanh.f32 %v927_v34  ;;  %v865_v41 = vadd.f32 %v801_v35, %v2430_v18  ;;  %v739_v42 = vmul.f32 %v675_v36, %v2443_v29  ;;  %v2457_v43 = vadd.f32 %v434_v40, %v2414_v9  ;;  %v436_v44 = vpop.f32.mrb[7].mxu0 }
 0x16e   : > { %v866_v45 = vadd.f32 %v802_v38, %v2434_v21  ;;  %v740_v46 = vmul.f32 %v676_v39, %v2448_v33  ;;  %v2462_v47 = vadd.f32 %v436_v44, %v2416_v10  ;;  %1795 = vtanh.f32 %v928_v37 }
 0x16f   : > { %v929_v48 = vmul.f32 0.7978846, %v865_v41  ;;  %v803_v49 = vmul.f32 0.044715, %v739_v42  ;;  %v677_v50 = vmul.f32 %v2457_v43, %v2457_v43  ;;  %v610_v44 = vmul.f32 0.5, %v2434_v21 }
 0x170   : > { %v930_v51 = vmul.f32 0.7978846, %v866_v45  ;;  %v804_v52 = vmul.f32 0.044715, %v740_v46  ;;  %v678_v54 = vmul.f32 %v2462_v47, %v2462_v47  ;;  %v440_v55 = vpop.f32.mrb[8].mxu0  ;;  %v611_v46 = vmul.f32 0.5, %v2443_v29 }
 0x171   : > { %v867_v56 = vadd.f32 %v803_v49, %v2443_v29  ;;  %v741_v57 = vmul.f32 %v677_v50, %v2457_v43  ;;  %v442_v58 = vpop.f32.mrb[9].mxu0  ;;  %1797 = vtanh.f32 %v929_v48  ;;  %v2473_v61 = vadd.f32 %v440_v55, %v2414_v9 }
 0x172   : > { %v868_v59 = vadd.f32 %v804_v52, %v2448_v33  ;;  %v742_v60 = vmul.f32 %v678_v54, %v2462_v47  ;;  %1799 = vtanh.f32 %v930_v51  ;;  %v2476_v1 = vadd.f32 %v442_v58, %v2416_v10 }
 0x173   : > { %v931_v62 = vmul.f32 0.7978846, %v867_v56  ;;  %v805_v63 = vmul.f32 0.044715, %v741_v57  ;;  %v679_v8 = vmul.f32 %v2473_v61, %v2473_v61  ;;  %v612_v51 = vmul.f32 0.5, %v2448_v33 }
 0x174   : > { %v932_v2 = vmul.f32 0.7978846, %v868_v59  ;;  %v806_v3 = vmul.f32 0.044715, %v742_v60  ;;  %v446_v4 = vpop.f32.mrb[10].mxu0  ;;  %v680_v14 = vmul.f32 %v2476_v1, %v2476_v1  ;;  %v613_v57 = vmul.f32 0.5, %v2457_v43 }
 0x175   : > { %v869_v53 = vadd.f32 %v805_v63, %v2457_v43  ;;  %v2480_v5 = vadd.f32 %v446_v4, %v2414_v9  ;;  %v448_v6 = vpop.f32.mrb[11].mxu0  ;;  %1801 = vtanh.f32 %v931_v62  ;;  %v743_v30 = vmul.f32 %v679_v8, %v2473_v61 }
 0x176   : > { %v870_v7 = vadd.f32 %v806_v3, %v2462_v47  ;;  %v2486_v11 = vadd.f32 %v448_v6, %v2416_v10  ;;  %1803 = vtanh.f32 %v932_v2  ;;  %v744_v37 = vmul.f32 %v680_v14, %v2476_v1 }
 0x177   : > { %v1794_v13 = vpop.eup %1793  ;;  %v681_v15 = vmul.f32 %v2480_v5, %v2480_v5  ;;  %v933_v19 = vmul.f32 0.7978846, %v869_v53  ;;  %v807_v48 = vmul.f32 0.044715, %v743_v30 }
 0x178   : > { %v1796_v16 = vpop.eup %1795  ;;  %v1055_v17 = vadd.f32 1.0, %v1794_v13  ;;  %v934_v20 = vmul.f32 0.7978846, %v870_v7  ;;  %v682_v22 = vmul.f32 %v2486_v11, %v2486_v11  ;;  %v452_v23 = vpop.f32.mrb[12].mxu0  ;;  %v808_v62 = vmul.f32 0.044715, %v744_v37 }
 0x179   : > { %v2496_v25 = vadd.f32 %v452_v23, %v2414_v9  ;;  %v454_v26 = vpop.f32.mrb[13].mxu0  ;;  %v1056_v28 = vadd.f32 1.0, %v1796_v16  ;;  %v745_v35 = vmul.f32 %v681_v15, %v2480_v5  ;;  %v871_v43 = vadd.f32 %v807_v48, %v2473_v61 }
 0x17a   : > { %v2501_v31 = vadd.f32 %v454_v26, %v2416_v10  ;;  %1805 = vtanh.f32 %v934_v20  ;;  %v746_v12 = vmul.f32 %v682_v22, %v2486_v11  ;;  %v1119_v39 = vmul.f32 %v1055_v17, %v607_v24 }
 0x17b   : > { %v1798_v34 = vpop.eup %1797  ;;  %v1120_v36 = vmul.f32 %v1056_v28, %v608_v27  ;;  %1807 = vtanh.f32 %v933_v19  ;;  %v683_v18 = vmul.f32 %v2496_v25, %v2496_v25  ;;  %v809_v54 = vmul.f32 0.044715, %v745_v35 }
 0x17c   : > { %v1800_v38 = vpop.eup %1799  ;;  %v684_v0 = vmul.f32 %v2501_v31, %v2501_v31  ;;  %v458_v40 = vpop.f32.mrb[14].mxu0  ;;  %v1057_v41 = vadd.f32 1.0, %v1798_v34  ;;  %v810_v55 = vmul.f32 0.044715, %v746_v12  ;;  %v614_v7 = vmul.f32 0.5, %v2462_v47 }
 0x17d   : > { %v460_v42 = vpop.f32.mrb[15].mxu0  ;;  %1286 = vmatprep.mubr.f32.mxu0 %v1120_v36  ;;  %v1058_v45 = vadd.f32 1.0, %v1800_v38  ;;  %v2514_v49 = vadd.f32 %v458_v40, %v2414_v9  ;;  %v747_v63 = vmul.f32 %v683_v18, %v2496_v25  ;;  %v873_v8 = vadd.f32 %v809_v54, %v2480_v5 }
 0x17e   : > { %v2517_v50 = vadd.f32 %v460_v42, %v2416_v10  ;;  %1287 = vmatmul.mubr.f32.vlgmr.msra.gmra.mrb[64].mxu0 %v1119_v39  ;;  %v748_v58 = vmul.f32 %v684_v0, %v2501_v31  ;;  %v1121_v59 = vmul.f32 %v1057_v41, %v609_v32  ;;  %v874_v13 = vadd.f32 %v810_v55, %v2486_v11 }
 0x17f   : > { %v1802_v52 = vpop.eup %1801  ;;  %v1122_v56 = vmul.f32 %v1058_v45, %v610_v44  ;;  %v685_v53 = vmul.f32 %v2514_v49, %v2514_v49  ;;  %v872_v23 = vadd.f32 %v808_v62, %v2476_v1  ;;  %v811_v24 = vmul.f32 0.044715, %v747_v63 }
 0x180   : > { %v1804_v21 = vpop.eup %1803  ;;  %v464_v29 = vpop.f32.mrb[16].mxu0  ;;  %v1059_v60 = vadd.f32 1.0, %v1802_v52  ;;  %v686_v2 = vmul.f32 %v2517_v50, %v2517_v50  ;;  %v812_v17 = vmul.f32 0.044715, %v748_v58  ;;  %v935_v32 = vmul.f32 0.7978846, %v871_v43 }
 0x181   : > { %v2526_v33 = vadd.f32 %v464_v29, %v2414_v9  ;;  %v466_v3 = vpop.f32.mrb[17].mxu0  ;;  %1291 = vmatprep.mubr.f32.mxu0 %v1122_v56  ;;  %v1060_v4 = vadd.f32 1.0, %v1804_v21  ;;  %v749_v34 = vmul.f32 %v685_v53, %v2514_v49  ;;  %v936_v12 = vmul.f32 0.7978846, %v872_v23 }
 0x182   : > { %v2532_v6 = vadd.f32 %v466_v3, %v2416_v10  ;;  %1292 = vmatmul.mubr.f32.gmra.mrb[66].mxu0 %v1121_v59  ;;  %v1123_v22 = vmul.f32 %v1059_v60, %v611_v46  ;;  %v750_v47 = vmul.f32 %v686_v2, %v2517_v50  ;;  %v937_v36 = vmul.f32 0.7978846, %v873_v8 }
 0x183   : > { %v687_v14 = vmul.f32 %v2526_v33, %v2526_v33  ;;  %v1124_v15 = vmul.f32 %v1060_v4, %v612_v51  ;;  %v876_v0 = vadd.f32 %v812_v17, %v2501_v31  ;;  %v938_v44 = vmul.f32 0.7978846, %v874_v13 }
 0x184   : > { %v1806_v16 = vpop.eup %1805  ;;  %v688_v19 = vmul.f32 %v2532_v6, %v2532_v6  ;;  %v470_v20 = vpop.f32.mrb[18].mxu0  ;;  %v875_v45 = vadd.f32 %v811_v24, %v2496_v25  ;;  %v814_v46 = vmul.f32 0.044715, %v750_v47  ;;  %1809 = vtanh.f32 %v936_v12 }
 0x185   : > { %v2544_v26 = vadd.f32 %v470_v20, %v2414_v9  ;;  %v472_v27 = vpop.f32.mrb[19].mxu0  ;;  %1296 = vmatprep.mubr.f32.mxu0 %v1124_v15  ;;  %v1062_v28 = vadd.f32 1.0, %v1806_v16  ;;  %v1808_v30 = vpop.eup %1807  ;;  %v751_v37 = vmul.f32 %v687_v14, %v2526_v33  ;;  %v813_v51 = vmul.f32 0.044715, %v749_v34 }
 0x186   : > { %v2548_v35 = vadd.f32 %v472_v27, %v2416_v10  ;;  %1297 = vmatmul.mubr.f32.gmra.mrb[68].mxu0 %v1123_v22  ;;  %v752_v40 = vmul.f32 %v688_v19, %v2532_v6  ;;  %v1061_v42 = vadd.f32 1.0, %v1808_v30  ;;  %1811 = vtanh.f32 %v935_v32 }
 0x187   : > { %v689_v38 = vmul.f32 %v2544_v26, %v2544_v26  ;;  %v1126_v39 = vmul.f32 %v1062_v28, %v614_v7  ;;  %v815_v56 = vmul.f32 0.044715, %v751_v37  ;;  %v940_v21 = vmul.f32 0.7978846, %v876_v0 }
 0x188   : > { %v690_v41 = vmul.f32 %v2548_v35, %v2548_v35  ;;  %v476_v18 = vpop.f32.mrb[20].mxu0  ;;  %v1125_v55 = vmul.f32 %v1061_v42, %v613_v57  ;;  %v816_v58 = vmul.f32 0.044715, %v752_v40  ;;  %v939_v60 = vmul.f32 0.7978846, %v875_v45 }
 0x189   : > { %v478_v48 = vpop.f32.mrb[21].mxu0  ;;  %1301 = vmatprep.mubr.f32.mxu0 %v1126_v39  ;;  %v753_v52 = vmul.f32 %v689_v38, %v2544_v26  ;;  %v2560_v54 = vadd.f32 %v476_v18, %v2414_v9  ;;  %v878_v62 = vadd.f32 %v814_v46, %v2517_v50  ;;  %1813 = vtanh.f32 %v938_v44 }
 0x18a   : > { %v754_v29 = vmul.f32 %v690_v41, %v2548_v35  ;;  %1302 = vmatmul.mubr.f32.gmra.mrb[70].mxu0 %v1125_v55  ;;  %v2565_v63 = vadd.f32 %v478_v48, %v2416_v10  ;;  %v877_v3 = vadd.f32 %v813_v51, %v2514_v49  ;;  %1815 = vtanh.f32 %v937_v36 }
 0x18b   : > { %v817_v4 = vmul.f32 0.044715, %v753_v52  ;;  %v691_v57 = vmul.f32 %v2560_v54, %v2560_v54  ;;  %v879_v43 = vadd.f32 %v815_v56, %v2526_v33  ;;  %v880_v7 = vadd.f32 %v816_v58, %v2532_v6 }
 0x18c   : > { %v482_v59 = vpop.f32.mrb[22].mxu0  ;;  %v818_v8 = vmul.f32 0.044715, %v754_v29  ;;  %v615_v13 = vmul.f32 0.5, %v2473_v61  ;;  %1817 = vtanh.f32 %v940_v21  ;;  %v942_v15 = vmul.f32 0.7978846, %v878_v62 }
 0x18d   : > { %v484_v2 = vpop.f32.mrb[23].mxu0  ;;  %v2572_v53 = vadd.f32 %v482_v59, %v2414_v9  ;;  %v692_v16 = vmul.f32 %v2565_v63, %v2565_v63  ;;  %v616_v17 = vmul.f32 0.5, %v2476_v1  ;;  %v617_v20 = vmul.f32 0.5, %v2480_v5 }
 0x18e   : > { %v2580_v22 = vmul.f32 0.7978846, %v877_v3  ;;  %v881_v23 = vadd.f32 %v817_v4, %v2544_v26  ;;  %v755_v24 = vmul.f32 %v691_v57, %v2560_v54  ;;  %1819 = vtanh.f32 %v939_v60  ;;  %v1810_v47 = vpop.eup %1809 }
 0x18f   : > { %v2584_v61 = vmul.f32 0.7978846, %v879_v43  ;;  %v693_v27 = vmul.f32 %v2572_v53, %v2572_v53  ;;  %v2589_v28 = vadd.f32 %v484_v2, %v2416_v10  ;;  %v2594_v5 = vmul.f32 0.7978846, %v880_v7 }
 0x190   : > { %v488_v14 = vpop.f32.mrb[24].mxu0  ;;  %v882_v30 = vadd.f32 %v818_v8, %v2548_v35  ;;  %v1064_v32 = vadd.f32 1.0, %v1810_v47  ;;  %v618_v34 = vmul.f32 0.5, %v2486_v11  ;;  %v1812_v36 = vpop.eup %1811  ;;  %v756_v37 = vmul.f32 %v692_v16, %v2565_v63 }
 0x191   : > { %v490_v19 = vpop.f32.mrb[25].mxu0  ;;  %v2592_v1 = vadd.f32 %v488_v14, %v2414_v9  ;;  %1821 = vtanh.f32 %v942_v15  ;;  %v2605_v40 = vmul.f32 0.7978846, %v881_v23  ;;  %v819_v41 = vmul.f32 0.044715, %v755_v24 }
 0x192   : > { %v2600_v38 = vadd.f32 %v490_v19, %v2416_v10  ;;  %v1128_v18 = vmul.f32 %v1064_v32, %v616_v17  ;;  %v1063_v42 = vadd.f32 1.0, %v1812_v36  ;;  %v757_v11 = vmul.f32 %v693_v27, %v2572_v53 }
 0x193   : > { %v1814_v44 = vpop.eup %1813  ;;  %v694_v45 = vmul.f32 %v2589_v28, %v2589_v28  ;;  %v695_v46 = vmul.f32 %v2592_v1, %v2592_v1  ;;  %v2615_v52 = vmul.f32 0.7978846, %v882_v30  ;;  %v620_v21 = vmul.f32 0.5, %v2501_v31 }
 0x194   : > { %v494_v12 = vpop.f32.mrb[26].mxu0  ;;  %v1816_v51 = vpop.eup %1815  ;;  %1306 = vmatprep.mubr.f32.mxu1 %v1128_v18  ;;  %v1127_v55 = vmul.f32 %v1063_v42, %v615_v13  ;;  %v1066_v56 = vadd.f32 1.0, %v1814_v44  ;;  %v820_v29 = vmul.f32 0.044715, %v756_v37  ;;  %v696_v59 = vmul.f32 %v2600_v38, %v2600_v38 }
 0x195   : > { %v2603_v39 = vadd.f32 %v494_v12, %v2414_v9  ;;  %v496_v0 = vpop.f32.mrb[27].mxu0  ;;  %v1065_v60 = vadd.f32 1.0, %v1816_v51  ;;  %v883_v7 = vadd.f32 %v819_v41, %v2560_v54  ;;  %v821_v8 = vmul.f32 0.044715, %v757_v11 }
 0x196   : > { %v2613_v48 = vadd.f32 %v496_v0, %v2416_v10  ;;  %v1818_v3 = vpop.eup %1817  ;;  %1307 = vmatmul.mubr.f32.vlgmr.msra.gmra.mrb[0].mxu1 %v1127_v55  ;;  %v1130_v4 = vmul.f32 %v1066_v56, %v618_v34  ;;  %v758_v13 = vmul.f32 %v694_v45, %v2589_v28  ;;  %v759_v14 = vmul.f32 %v695_v46, %v2592_v1 }
 0x197   : > { %v697_v62 = vmul.f32 %v2603_v39, %v2603_v39  ;;  %v1129_v16 = vmul.f32 %v1065_v60, %v617_v20  ;;  %v1068_v17 = vadd.f32 1.0, %v1818_v3  ;;  %v619_v19 = vmul.f32 0.5, %v2496_v25 }
 0x198   : > { %v500_v58 = vpop.f32.mrb[28].mxu0  ;;  %v698_v57 = vmul.f32 %v2613_v48, %v2613_v48  ;;  %v1820_v15 = vpop.eup %1819  ;;  %1311 = vmatprep.mubr.f32.mxu1 %v1130_v4  ;;  %v884_v47 = vadd.f32 %v820_v29, %v2565_v63  ;;  %v760_v27 = vmul.f32 %v696_v59, %v2600_v38  ;;  %1823 = vtanh.f32 %v2580_v22 }
 0x199   : > { %v502_v2 = vpop.f32.mrb[29].mxu0  ;;  %v2625_v43 = vadd.f32 %v500_v58, %v2414_v9  ;;  %v1067_v30 = vadd.f32 1.0, %v1820_v15  ;;  %v761_v12 = vmul.f32 %v697_v62, %v2603_v39  ;;  %v1132_v36 = vmul.f32 %v1068_v17, %v620_v21 }
 0x19a   : > { %v2628_v31 = vadd.f32 %v502_v2, %v2416_v10  ;;  %1312 = vmatmul.mubr.f32.gmra.mrb[2].mxu1 %v1129_v16  ;;  %v762_v20 = vmul.f32 %v698_v57, %v2613_v48  ;;  %v885_v37 = vadd.f32 %v821_v8, %v2572_v53  ;;  %v822_v0 = vmul.f32 0.044715, %v758_v13 }
 0x19b   : > { %v699_v23 = vmul.f32 %v2625_v43, %v2625_v43  ;;  %v1822_v25 = vpop.eup %1821  ;;  %v823_v41 = vmul.f32 0.044715, %v759_v14  ;;  %v622_v18 = vmul.f32 0.5, %v2517_v50  ;;  %1316 = vmatprep.mubr.f32.mxu1 %v1132_v36  ;;  %v1131_v42 = vmul.f32 %v1067_v30, %v619_v19 }
 0x19c   : > { %v506_v24 = vpop.f32.mrb[30].mxu0  ;;  %v700_v32 = vmul.f32 %v2628_v31, %v2628_v31  ;;  %v1070_v11 = vadd.f32 1.0, %v1822_v25  ;;  %v947_v51 = vmul.f32 0.7978846, %v883_v7  ;;  %v824_v55 = vmul.f32 0.044715, %v760_v27 }
 0x19d   : > { %v508_v34 = vpop.f32.mrb[31].mxu0  ;;  %v763_v44 = vmul.f32 %v699_v23, %v2625_v43  ;;  %v2647_v45 = vadd.f32 %v506_v24, %v2414_v9  ;;  %1825 = vtanh.f32 %v2594_v5  ;;  %v825_v21 = vmul.f32 0.044715, %v761_v12 }
 0x19e   : > { %v764_v22 = vmul.f32 %v700_v32, %v2628_v31  ;;  %v826_v58 = vmul.f32 0.044715, %v762_v20  ;;  %1317 = vmatmul.mubr.f32.gmra.mrb[4].mxu1 %v1131_v42  ;;  %v1134_v50 = vmul.f32 %v1070_v11, %v622_v18  ;;  %v2652_v29 = vadd.f32 %v508_v34, %v2416_v10 }
 0x19f   : > { %v948_v59 = vmul.f32 0.7978846, %v884_v47  ;;  %v886_v60 = vadd.f32 %v822_v0, %v2589_v28  ;;  %v887_v62 = vadd.f32 %v823_v41, %v2592_v1  ;;  %1827 = vtanh.f32 %v2584_v61 }
 0x1a0   : > { %v512_v46 = vpop.f32.mrb[32].mxu0  ;;  %v2657_v2 = vmul.f32 0.7978846, %v885_v37  ;;  %v827_v3 = vmul.f32 0.044715, %v763_v44  ;;  %1321 = vmatprep.mubr.f32.mxu1 %v1134_v50  ;;  %v701_v5 = vmul.f32 %v2647_v45, %v2647_v45  ;;  %v888_v7 = vadd.f32 %v824_v55, %v2600_v38 }
 0x1a1   : > { %v514_v56 = vpop.f32.mrb[33].mxu0  ;;  %v2662_v4 = vadd.f32 %v512_v46, %v2414_v9  ;;  %v828_v8 = vmul.f32 0.044715, %v764_v22  ;;  %1829 = vtanh.f32 %v2615_v52  ;;  %v889_v14 = vadd.f32 %v825_v21, %v2603_v39 }
 0x1a2   : > { %v2666_v13 = vadd.f32 %v514_v56, %v2416_v10  ;;  %v890_v15 = vadd.f32 %v826_v58, %v2613_v48  ;;  %v702_v16 = vmul.f32 %v2652_v29, %v2652_v29  ;;  %1831 = vtanh.f32 %v2605_v40  ;;  %v1824_v47 = vpop.eup %1823 }
 0x1a3   : > { %v950_v17 = vmul.f32 0.7978846, %v886_v60  ;;  %v2674_v19 = vmul.f32 0.7978846, %v887_v62  ;;  %v621_v23 = vmul.f32 0.5, %v2514_v49  ;;  %v891_v52 = vadd.f32 %v827_v3, %v2625_v43 }
 0x1a4   : > { %v518_v57 = vpop.f32.mrb[34].mxu0  ;;  %v765_v27 = vmul.f32 %v701_v5, %v2647_v45  ;;  %v703_v30 = vmul.f32 %v2662_v4, %v2662_v4  ;;  %1833 = vtanh.f32 %v948_v59  ;;  %v892_v40 = vadd.f32 %v828_v8, %v2628_v31 }
 0x1a5   : > { %v520_v61 = vpop.f32.mrb[35].mxu0  ;;  %v2678_v24 = vadd.f32 %v518_v57, %v2414_v9  ;;  %v1069_v34 = vadd.f32 1.0, %v1824_v47  ;;  %v704_v12 = vmul.f32 %v2666_v13, %v2666_v13  ;;  %v952_v36 = vmul.f32 0.7978846, %v888_v7 }
 0x1a6   : > { %v2688_v49 = vadd.f32 %v520_v61, %v2416_v10  ;;  %v2690_v25 = vmul.f32 0.7978846, %v889_v14  ;;  %v2692_v37 = vmul.f32 0.7978846, %v890_v15  ;;  %v766_v0 = vmul.f32 %v702_v16, %v2652_v29 }
 0x1a7   : > { %v1826_v41 = vpop.eup %1825  ;;  %v1133_v18 = vmul.f32 %v1069_v34, %v621_v23  ;;  %v624_v42 = vmul.f32 0.5, %v2532_v6  ;;  %v705_v44 = vmul.f32 %v2678_v24, %v2678_v24  ;;  %1835 = vtanh.f32 %v947_v51 }
 0x1a8   : > { %v524_v32 = vpop.f32.mrb[36].mxu0  ;;  %v829_v11 = vmul.f32 0.044715, %v765_v27  ;;  %v1072_v46 = vadd.f32 1.0, %v1826_v41  ;;  %v623_v55 = vmul.f32 0.5, %v2526_v33  ;;  %v767_v22 = vmul.f32 %v703_v30, %v2662_v4 }
 0x1a9   : > { %v526_v20 = vpop.f32.mrb[37].mxu0  ;;  %v1828_v21 = vpop.eup %1827  ;;  %v2700_v58 = vmul.f32 0.7978846, %v891_v52  ;;  %v2702_v50 = vmul.f32 0.7978846, %v892_v40  ;;  %1322 = vmatmul.mubr.f32.gmra.mrb[6].mxu1 %v1133_v18  ;;  %v768_v59 = vmul.f32 %v704_v12, %v2666_v13  ;;  %v706_v6 = vmul.f32 %v2688_v49, %v2688_v49 }
 0x1aa   : > { %v830_v51 = vmul.f32 0.044715, %v766_v0  ;;  %v1136_v62 = vmul.f32 %v1072_v46, %v624_v42  ;;  %v1071_v3 = vadd.f32 1.0, %v1828_v21  ;;  %v2708_v33 = vadd.f32 %v524_v32, %v2414_v9 }
 0x1ab   : > { %v1830_v5 = vpop.eup %1829  ;;  %v626_v57 = vmul.f32 0.5, %v2548_v35  ;;  %v625_v7 = vmul.f32 0.5, %v2544_v26  ;;  %v769_v8 = vmul.f32 %v705_v44, %v2678_v24  ;;  %1837 = vtanh.f32 %v950_v17 }
 0x1ac   : > { %v530_v56 = vpop.f32.mrb[38].mxu0  ;;  %v1832_v61 = vpop.eup %1831  ;;  %v893_v14 = vadd.f32 %v829_v11, %v2647_v45  ;;  %1326 = vmatprep.mubr.f32.mxu1 %v1136_v62  ;;  %v1135_v15 = vmul.f32 %v1071_v3, %v623_v55  ;;  %v831_v16 = vmul.f32 0.044715, %v767_v22  ;;  %v1074_v23 = vadd.f32 1.0, %v1830_v5 }
 0x1ad   : > { %v532_v60 = vpop.f32.mrb[39].mxu0  ;;  %v832_v52 = vmul.f32 0.044715, %v768_v59  ;;  %v1073_v27 = vadd.f32 1.0, %v1832_v61  ;;  %v770_v30 = vmul.f32 %v706_v6, %v2688_v49  ;;  %v2716_v32 = vadd.f32 %v526_v20, %v2416_v10 }
 0x1ae   : > { %v1834_v26 = vpop.eup %1833  ;;  %v894_v40 = vadd.f32 %v830_v51, %v2652_v29  ;;  %1327 = vmatmul.mubr.f32.gmra.mrb[8].mxu1 %v1135_v15  ;;  %v1138_v17 = vmul.f32 %v1074_v23, %v626_v57  ;;  %v707_v34 = vmul.f32 %v2708_v33, %v2708_v33  ;;  %1839 = vtanh.f32 %v2657_v2 }
 0x1af   : > { %v833_v12 = vmul.f32 0.044715, %v769_v8  ;;  %v628_v0 = vmul.f32 0.5, %v2565_v63  ;;  %v1076_v41 = vadd.f32 1.0, %v1834_v26  ;;  %v2724_v18 = vadd.f32 %v530_v56, %v2414_v9 }
 0x1b0   : > { %v536_v47 = vpop.f32.mrb[40].mxu0  ;;  %v2726_v20 = vmul.f32 0.7978846, %v893_v14  ;;  %v895_v42 = vadd.f32 %v831_v16, %v2662_v4  ;;  %1331 = vmatprep.mubr.f32.mxu1 %v1138_v17  ;;  %v1137_v44 = vmul.f32 %v1073_v27, %v625_v7  ;;  %1841 = vtanh.f32 %v952_v36 }
 0x1b1   : > { %v538_v35 = vpop.f32.mrb[41].mxu0  ;;  %v1836_v46 = vpop.eup %1835  ;;  %v896_v55 = vadd.f32 %v832_v52, %v2666_v13  ;;  %v834_v22 = vmul.f32 0.044715, %v770_v30  ;;  %v1140_v2 = vmul.f32 %v1076_v41, %v628_v0  ;;  %v708_v63 = vmul.f32 %v2716_v32, %v2716_v32 }
 0x1b2   : > { %1332 = vmatmul.mubr.f32.gmra.mrb[10].mxu1 %v1137_v44  ;;  %v627_v56 = vmul.f32 0.5, %v2560_v54  ;;  %v1075_v59 = vadd.f32 1.0, %v1836_v46  ;;  %v771_v6 = vmul.f32 %v707_v34, %v2708_v33  ;;  %1843 = vtanh.f32 %v2674_v19 }
 0x1b3   : > { %v2735_v51 = vmul.f32 0.7978846, %v894_v40  ;;  %v897_v36 = vadd.f32 %v833_v12, %v2678_v24  ;;  %1336 = vmatprep.mubr.f32.mxu1 %v1140_v2  ;;  %v709_v62 = vmul.f32 %v2724_v18, %v2724_v18  ;;  %v2741_v3 = vadd.f32 %v532_v60, %v2416_v10 }
 0x1b4   : > { %v542_v11 = vpop.f32.mrb[42].mxu0  ;;  %v2743_v5 = vmul.f32 0.7978846, %v895_v42  ;;  %v1139_v57 = vmul.f32 %v1075_v59, %v627_v56  ;;  %v630_v54 = vmul.f32 0.5, %v2589_v28  ;;  %v2747_v7 = vadd.f32 %v536_v47, %v2414_v9 }
 0x1b5   : > { %v544_v21 = vpop.f32.mrb[43].mxu0  ;;  %v1838_v8 = vpop.eup %1837  ;;  %v2749_v61 = vmul.f32 0.7978846, %v896_v55  ;;  %v898_v14 = vadd.f32 %v834_v22, %v2688_v49  ;;  %v772_v15 = vmul.f32 %v708_v63, %v2716_v32  ;;  %1845 = vtanh.f32 %v2692_v37 }
 0x1b6   : > { %1337 = vmatmul.mubr.f32.gmra.mrb[12].mxu1 %v1139_v57  ;;  %v835_v16 = vmul.f32 0.044715, %v771_v6  ;;  %v1078_v23 = vadd.f32 1.0, %v1838_v8  ;;  %v2757_v28 = vadd.f32 %v538_v35, %v2416_v10  ;;  %1847 = vtanh.f32 %v2690_v25 }
 0x1b7   : > { %v2760_v47 = vmul.f32 0.7978846, %v897_v36  ;;  %v629_v52 = vmul.f32 0.5, %v2572_v53  ;;  %v773_v27 = vmul.f32 %v709_v62, %v2724_v18  ;;  %v710_v30 = vmul.f32 %v2741_v3, %v2741_v3 }
 0x1b8   : > { %v548_v19 = vpop.f32.mrb[44].mxu0  ;;  %v1840_v37 = vpop.eup %1839  ;;  %v1142_v26 = vmul.f32 %v1078_v23, %v630_v54  ;;  %v711_v40 = vmul.f32 %v2747_v7, %v2747_v7  ;;  %v2769_v17 = vadd.f32 %v542_v11, %v2414_v9  ;;  %v2772_v35 = vadd.f32 %v544_v21, %v2416_v10 }
 0x1b9   : > { %v2754_v60 = vpop.f32.mrb[45].mxu0  ;;  %v2774_v34 = vmul.f32 0.7978846, %v898_v14  ;;  %v836_v53 = vmul.f32 0.044715, %v772_v15  ;;  %v1077_v12 = vadd.f32 1.0, %v1840_v37  ;;  %v899_v42 = vadd.f32 %v835_v16, %v2708_v33 }
 0x1ba   : > { %v1842_v41 = vpop.eup %1841  ;;  %1341 = vmatprep.mubr.f32.mxu1 %v1142_v26  ;;  %v632_v44 = vmul.f32 0.5, %v2600_v38  ;;  %v712_v11 = vmul.f32 %v2757_v28, %v2757_v28  ;;  %1849 = vtanh.f32 %v2702_v50  ;;  %v837_v55 = vmul.f32 0.044715, %v773_v27 }
 0x1bb   : > { %v1141_v46 = vmul.f32 %v1077_v12, %v629_v52  ;;  %v774_v22 = vmul.f32 %v710_v30, %v2741_v3  ;;  %v1080_v2 = vadd.f32 1.0, %v1842_v41  ;;  %v775_v21 = vmul.f32 %v711_v40, %v2747_v7 }
 0x1bc   : > { %v554_v25 = vpop.f32.mrb[46].mxu0  ;;  %v1844_v63 = vpop.eup %1843  ;;  %v713_v56 = vmul.f32 %v2769_v17, %v2769_v17  ;;  %v714_v59 = vmul.f32 %v2772_v35, %v2772_v35  ;;  %1851 = vtanh.f32 %v2700_v58  ;;  %v631_v50 = vmul.f32 0.5, %v2592_v1 }
 0x1bd   : > { %v2776_v0 = vpop.f32.mrb[47].mxu0  ;;  %1342 = vmatmul.mubr.f32.gmra.mrb[14].mxu1 %v1141_v46  ;;  %v1144_v6 = vmul.f32 %v1080_v2, %v632_v44  ;;  %v1079_v36 = vadd.f32 1.0, %v1844_v63  ;;  %v2792_v62 = vadd.f32 %v548_v19, %v2414_v9  ;;  %v2796_v54 = vmul.f32 0.7978846, %v899_v42 }
 0x1be   : > { %v900_v8 = vadd.f32 %v836_v53, %v2716_v32  ;;  %v776_v14 = vmul.f32 %v712_v11, %v2757_v28  ;;  %v634_v15 = vmul.f32 0.5, %v2613_v48  ;;  %v901_v16 = vadd.f32 %v837_v55, %v2724_v18 }
 0x1bf   : > { %v1846_v58 = vpop.eup %1845  ;;  %v838_v23 = vmul.f32 0.044715, %v774_v22  ;;  %1346 = vmatprep.mubr.f32.mxu1 %v1144_v6  ;;  %v1143_v1 = vmul.f32 %v1079_v36, %v631_v50  ;;  %1853 = vtanh.f32 %v2735_v51  ;;  %v839_v52 = vmul.f32 0.044715, %v775_v21 }
 0x1c0   : > { %v560_v38 = vpop.f32.mrb[48].mxu0  ;;  %v1848_v19 = vpop.eup %1847  ;;  %v1082_v27 = vadd.f32 1.0, %v1846_v58  ;;  %v777_v30 = vmul.f32 %v713_v56, %v2769_v17  ;;  %v778_v37 = vmul.f32 %v714_v59, %v2772_v35  ;;  %v633_v40 = vmul.f32 0.5, %v2603_v39 }
 0x1c1   : > { %v2794_v57 = vpop.f32.mrb[49].mxu0  ;;  %1347 = vmatmul.mubr.f32.gmra.mrb[16].mxu1 %v1143_v1  ;;  %v1081_v48 = vadd.f32 1.0, %v1848_v19  ;;  %v715_v53 = vmul.f32 %v2792_v62, %v2792_v62  ;;  %1855 = vtanh.f32 %v2726_v20  ;;  %v2811_v51 = vmul.f32 0.7978846, %v900_v8 }
 0x1c2   : > { %v840_v41 = vmul.f32 0.044715, %v776_v14  ;;  %v1146_v42 = vmul.f32 %v1082_v27, %v634_v15  ;;  %v2815_v44 = vadd.f32 %v2754_v60, %v2416_v10  ;;  %v2817_v11 = vmul.f32 0.7978846, %v901_v16 }
 0x1c3   : > { %v902_v39 = vadd.f32 %v838_v23, %v2741_v3  ;;  %v1145_v46 = vmul.f32 %v1081_v48, %v633_v40  ;;  %v2821_v55 = vadd.f32 %v554_v25, %v2414_v9  ;;  %v903_v20 = vadd.f32 %v839_v52, %v2747_v7 }
 0x1c4   : > { %v566_v26 = vpop.f32.mrb[50].mxu0  ;;  %v1850_v22 = vpop.eup %1849  ;;  %1351 = vmatprep.mubr.f32.mxu1 %v1146_v42  ;;  %v841_v2 = vmul.f32 0.044715, %v777_v30  ;;  %v842_v63 = vmul.f32 0.044715, %v778_v37  ;;  %1857 = vtanh.f32 %v2749_v61  ;;  %v636_v60 = vmul.f32 0.5, %v2628_v31 }
 0x1c5   : > { %v2809_v12 = vpop.f32.mrb[51].mxu0  ;;  %1352 = vmatmul.mubr.f32.gmra.mrb[18].mxu1 %v1145_v46  ;;  %v1084_v56 = vadd.f32 1.0, %v1850_v22  ;;  %v779_v59 = vmul.f32 %v715_v53, %v2792_v62  ;;  %v2831_v25 = vadd.f32 %v2776_v0, %v2416_v10  ;;  %v904_v36 = vadd.f32 %v840_v41, %v2757_v28 }
 0x1c6   : > { %v1852_v50 = vpop.eup %1851  ;;  %v635_v8 = vmul.f32 0.5, %v2625_v43  ;;  %v716_v61 = vmul.f32 %v2815_v44, %v2815_v44  ;;  %1859 = vtanh.f32 %v2743_v5  ;;  %v717_v15 = vmul.f32 %v2821_v55, %v2821_v55 }
 0x1c7   : > { %v1148_v31 = vmul.f32 %v1084_v56, %v636_v60  ;;  %v1083_v14 = vadd.f32 1.0, %v1852_v50  ;;  %v2843_v0 = vadd.f32 %v560_v38, %v2414_v9  ;;  %v966_v58 = vmul.f32 0.7978846, %v902_v39 }
 0x1c8   : > { %v2825_v21 = vpop.f32.mrb[52].mxu0  ;;  %v2845_v16 = vmul.f32 0.7978846, %v903_v20  ;;  %v905_v23 = vadd.f32 %v841_v2, %v2769_v17  ;;  %v906_v43 = vadd.f32 %v842_v63, %v2772_v35  ;;  %v843_v52 = vmul.f32 0.044715, %v779_v59 }
 0x1c9   : > { %v2833_v6 = vpop.f32.mrb[53].mxu0  ;;  %v1854_v19 = vpop.eup %1853  ;;  %1356 = vmatprep.mubr.f32.mxu1 %v1148_v31  ;;  %v1147_v5 = vmul.f32 %v1083_v14, %v635_v8  ;;  %v718_v27 = vmul.f32 %v2831_v25, %v2831_v25  ;;  %1861 = vtanh.f32 %v2774_v34  ;;  %v780_v30 = vmul.f32 %v716_v61, %v2815_v44 }
 0x1ca   : > { %v638_v37 = vmul.f32 0.5, %v2652_v29  ;;  %v1086_v40 = vadd.f32 1.0, %v1854_v19  ;;  %v2860_v48 = vadd.f32 %v2794_v57, %v2416_v10  ;;  %v2862_v41 = vmul.f32 0.7978846, %v904_v36 }
 0x1cb   : > { %v1856_v53 = vpop.eup %1855  ;;  %1357 = vmatmul.mubr.f32.gmra.mrb[20].mxu1 %v1147_v5  ;;  %v781_v42 = vmul.f32 %v717_v15, %v2821_v55  ;;  %v719_v34 = vmul.f32 %v2843_v0, %v2843_v0  ;;  %1863 = vtanh.f32 %v2760_v47  ;;  %v637_v46 = vmul.f32 0.5, %v2647_v45 }
 0x1cc   : > { %v2849_v1 = vpop.f32.mrb[54].mxu0  ;;  %v1150_v39 = vmul.f32 %v1086_v40, %v638_v37  ;;  %v1085_v29 = vadd.f32 1.0, %v1856_v53  ;;  %v2870_v22 = vadd.f32 %v566_v26, %v2414_v9  ;;  %v2874_v20 = vmul.f32 0.7978846, %v905_v23 }
 0x1cd   : > { %v2854_v38 = vpop.f32.mrb[55].mxu0  ;;  %v2876_v2 = vmul.f32 0.7978846, %v906_v43  ;;  %v907_v63 = vadd.f32 %v843_v52, %v2792_v62  ;;  %v782_v60 = vmul.f32 %v718_v27, %v2831_v25  ;;  %v844_v59 = vmul.f32 0.044715, %v780_v30 }
 0x1ce   : > { %v1858_v47 = vpop.eup %1857  ;;  %1361 = vmatprep.mubr.f32.mxu1 %v1150_v39  ;;  %v1149_v45 = vmul.f32 %v1085_v29, %v637_v46  ;;  %v720_v26 = vmul.f32 %v2860_v48, %v2860_v48  ;;  %1865 = vtanh.f32 %v2811_v51  ;;  %v845_v50 = vmul.f32 0.044715, %v781_v42 }
 0x1cf   : > { %v640_v36 = vmul.f32 0.5, %v2666_v13  ;;  %v1088_v8 = vadd.f32 1.0, %v1858_v47  ;;  %v783_v61 = vmul.f32 %v719_v34, %v2843_v0  ;;  %v639_v14 = vmul.f32 0.5, %v2662_v4 }
 0x1d0   : > { %v2872_v57 = vpop.f32.mrb[56].mxu0  ;;  %v1860_v31 = vpop.eup %1859  ;;  %1362 = vmatmul.mubr.f32.gmra.mrb[22].mxu1 %v1149_v45  ;;  %v721_v15 = vmul.f32 %v2870_v22, %v2870_v22  ;;  %v2892_v23 = vadd.f32 %v2809_v12, %v2416_v10  ;;  %1867 = vtanh.f32 %v2796_v54  ;;  %v846_v43 = vmul.f32 0.044715, %v782_v60 }
 0x1d1   : > { %v2880_v56 = vpop.f32.mrb[57].mxu0  ;;  %v1152_v13 = vmul.f32 %v1088_v8, %v640_v36  ;;  %v1087_v19 = vadd.f32 1.0, %v1860_v31  ;;  %v2899_v5 = vadd.f32 %v2825_v21, %v2414_v9  ;;  %v2903_v4 = vmul.f32 0.7978846, %v907_v63 }
 0x1d2   : > { %v908_v27 = vadd.f32 %v844_v59, %v2815_v44  ;;  %v784_v12 = vmul.f32 %v720_v26, %v2860_v48  ;;  %v642_v30 = vmul.f32 0.5, %v2688_v49  ;;  %v909_v37 = vadd.f32 %v845_v50, %v2821_v55 }
 0x1d3   : > { %v1862_v54 = vpop.eup %1861  ;;  %1366 = vmatprep.mubr.f32.mxu1 %v1152_v13  ;;  %v1151_v40 = vmul.f32 %v1087_v19, %v639_v14  ;;  %v847_v53 = vmul.f32 0.044715, %v783_v61  ;;  %1869 = vtanh.f32 %v966_v58  ;;  %v641_v21 = vmul.f32 0.5, %v2678_v24 }
 0x1d4   : > { %v2895_v51 = vpop.f32.mrb[58].mxu0  ;;  %v1090_v42 = vadd.f32 1.0, %v1862_v54  ;;  %v785_v34 = vmul.f32 %v721_v15, %v2870_v22  ;;  %v722_v39 = vmul.f32 %v2892_v23, %v2892_v23  ;;  %v910_v49 = vadd.f32 %v846_v43, %v2831_v25 }
 0x1d5   : > { %v2901_v52 = vpop.f32.mrb[59].mxu0  ;;  %v1864_v29 = vpop.eup %1863  ;;  %1367 = vmatmul.mubr.f32.gmra.mrb[24].mxu1 %v1151_v40  ;;  %v723_v63 = vmul.f32 %v2899_v5, %v2899_v5  ;;  %v2920_v58 = vadd.f32 %v2833_v6, %v2416_v10  ;;  %1871 = vtanh.f32 %v2817_v11  ;;  %v848_v60 = vmul.f32 0.044715, %v784_v12 }
 0x1d6   : > { %v1154_v47 = vmul.f32 %v1090_v42, %v642_v30  ;;  %v1089_v59 = vadd.f32 1.0, %v1864_v29  ;;  %v2927_v45 = vadd.f32 %v2849_v1, %v2414_v9  ;;  %v972_v26 = vmul.f32 0.7978846, %v908_v27 }
 0x1d7   : > { %v2929_v50 = vmul.f32 0.7978846, %v909_v37  ;;  %v911_v36 = vadd.f32 %v847_v53, %v2843_v0  ;;  %v2934_v6 = vadd.f32 %v2854_v38, %v2416_v10  ;;  %v849_v61 = vmul.f32 0.044715, %v785_v34 }
 0x1d8   : > { %v2913_v46 = vpop.f32.mrb[60].mxu0  ;;  %v1866_v8 = vpop.eup %1865  ;;  %1371 = vmatprep.mubr.f32.mxu1 %v1154_v47  ;;  %v1153_v11 = vmul.f32 %v1089_v59, %v641_v21  ;;  %v786_v31 = vmul.f32 %v722_v39, %v2892_v23  ;;  %1873 = vtanh.f32 %v2862_v41  ;;  %v644_v1 = vmul.f32 0.5, %v2716_v32 }
 0x1d9   : > { %v2923_v24 = vpop.f32.mrb[61].mxu0  ;;  %v1092_v15 = vadd.f32 1.0, %v1866_v8  ;;  %v787_v43 = vmul.f32 %v723_v63, %v2899_v5  ;;  %v724_v13 = vmul.f32 %v2920_v58, %v2920_v58  ;;  %v2946_v27 = vmul.f32 0.7978846, %v910_v49 }
 0x1da   : > { %v1868_v19 = vpop.eup %1867  ;;  %v912_v12 = vadd.f32 %v848_v60, %v2860_v48  ;;  %1372 = vmatmul.mubr.f32.gmra.mrb[26].mxu1 %v1153_v11  ;;  %v725_v41 = vmul.f32 %v2927_v45, %v2927_v45  ;;  %1875 = vtanh.f32 %v2845_v16  ;;  %v643_v30 = vmul.f32 0.5, %v2708_v33 }
 0x1db   : > { %v1156_v32 = vmul.f32 %v1092_v15, %v644_v1  ;;  %v1091_v54 = vadd.f32 1.0, %v1868_v19  ;;  %v726_v37 = vmul.f32 %v2934_v6, %v2934_v6  ;;  %v2955_v40 = vmul.f32 0.7978846, %v911_v36 }
 0x1dc   : > { %v2938_v14 = vpop.f32.mrb[62].mxu0  ;;  %v913_v53 = vadd.f32 %v849_v61, %v2870_v22  ;;  %v850_v42 = vmul.f32 0.044715, %v786_v31  ;;  %v2960_v21 = vadd.f32 %v2880_v56, %v2416_v10  ;;  %v851_v16 = vmul.f32 0.044715, %v787_v43 }
 0x1dd   : > { %v2944_v38 = vpop.f32.mrb[63].mxu0  ;;  %v1870_v34 = vpop.eup %1869  ;;  %1376 = vmatprep.mubr.f32.mxu1 %v1156_v32  ;;  %v1155_v39 = vmul.f32 %v1091_v54, %v643_v30  ;;  %v788_v29 = vmul.f32 %v724_v13, %v2920_v58  ;;  %1877 = vtanh.f32 %v2876_v2  ;;  %v646_v33 = vmul.f32 0.5, %v2741_v3 }
 0x1de   : > { %v1094_v49 = vadd.f32 1.0, %v1870_v34  ;;  %v789_v63 = vmul.f32 %v725_v41, %v2927_v45  ;;  %v2968_v60 = vadd.f32 %v2872_v57, %v2414_v9  ;;  %v2970_v56 = vmul.f32 0.7978846, %v912_v12 }
 0x1df   : > { %v1872_v47 = vpop.eup %1871  ;;  %1377 = vmatmul.mubr.f32.gmra.mrb[28].mxu1 %v1155_v39  ;;  %v645_v59 = vmul.f32 0.5, %v2724_v18  ;;  %v790_v36 = vmul.f32 %v726_v37, %v2934_v6  ;;  %1879 = vtanh.f32 %v2874_v20  ;;  %v2975_v2 = vmul.f32 0.7978846, %v913_v53 }
 0x1e0   : > { %v1158_v3 = vmul.f32 %v1094_v49, %v646_v33  ;;  %v1093_v8 = vadd.f32 1.0, %v1872_v47  ;;  %v728_v11 = vmul.f32 %v2960_v21, %v2960_v21  ;;  %v914_v57 = vadd.f32 %v850_v42, %v2892_v23 }
 0x1e1   : > { %v915_v61 = vadd.f32 %v851_v16, %v2899_v5  ;;  %v852_v31 = vmul.f32 0.044715, %v788_v29  ;;  %v2983_v1 = vadd.f32 %v2901_v52, %v2416_v10  ;;  %v853_v20 = vmul.f32 0.044715, %v789_v63 }
 0x1e2   : > { %v1874_v18 = vpop.eup %1873  ;;  %1381 = vmatprep.mubr.f32.mxu1 %v1158_v3  ;;  %v1157_v15 = vmul.f32 %v1093_v8, %v645_v59  ;;  %v727_v43 = vmul.f32 %v2968_v60, %v2968_v60  ;;  %1881 = vtanh.f32 %v972_v26  ;;  %v854_v13 = vmul.f32 0.044715, %v790_v36 }
 0x1e3   : > { %v648_v19 = vmul.f32 0.5, %v2757_v28  ;;  %v1096_v12 = vadd.f32 1.0, %v1874_v18  ;;  %v2990_v41 = vadd.f32 %v2895_v51, %v2414_v9  ;;  %v647_v52 = vmul.f32 0.5, %v2747_v7 }
 0x1e4   : > { %v1876_v32 = vpop.eup %1875  ;;  %1382 = vmatmul.mubr.f32.gmra.mrb[30].mxu1 %v1157_v15  ;;  %v792_v30 = vmul.f32 %v728_v11, %v2960_v21  ;;  %1883 = vtanh.f32 %v2903_v4  ;;  %v2997_v54 = vadd.f32 %v2923_v24, %v2416_v10  ;;  %v916_v26 = vadd.f32 %v852_v31, %v2920_v58 }
 0x1e5   : > { %v1160_v28 = vmul.f32 %v1096_v12, %v648_v19  ;;  %v1095_v37 = vadd.f32 1.0, %v1876_v32  ;;  %v730_v51 = vmul.f32 %v2983_v1, %v2983_v1  ;;  %v978_v53 = vmul.f32 0.7978846, %v914_v57 }
 0x1e6   : > { %v3002_v42 = vmul.f32 0.7978846, %v915_v61  ;;  %v917_v7 = vadd.f32 %v853_v20, %v2927_v45  ;;  %v791_v34 = vmul.f32 %v727_v43, %v2968_v60  ;;  %v918_v4 = vadd.f32 %v854_v13, %v2934_v6 }
 0x1e7   : > { %v1878_v39 = vpop.eup %1877  ;;  %1386 = vmatprep.mubr.f32.mxu1 %v1160_v28  ;;  %v1159_v24 = vmul.f32 %v1095_v37, %v647_v52  ;;  %v729_v16 = vmul.f32 %v2990_v41, %v2990_v41  ;;  %1885 = vtanh.f32 %v2946_v27  ;;  %v856_v29 = vmul.f32 0.044715, %v792_v30 }
 0x1e8   : > { %v650_v33 = vmul.f32 0.5, %v2772_v35  ;;  %v1098_v49 = vadd.f32 1.0, %v1878_v39  ;;  %v732_v63 = vmul.f32 %v2997_v54, %v2997_v54  ;;  %v980_v59 = vmul.f32 0.7978846, %v916_v26 }
 0x1e9   : > { %v1880_v47 = vpop.eup %1879  ;;  %1387 = vmatmul.mubr.f32.gmra.mrb[32].mxu1 %v1159_v24  ;;  %v649_v36 = vmul.f32 0.5, %v2769_v17  ;;  %v794_v3 = vmul.f32 %v730_v51, %v2983_v1  ;;  %1887 = vtanh.f32 %v2929_v50  ;;  %v855_v8 = vmul.f32 0.044715, %v791_v34 }
 0x1ea   : > { %v1162_v11 = vmul.f32 %v1098_v49, %v650_v33  ;;  %v1097_v57 = vadd.f32 1.0, %v1880_v47  ;;  %v3018_v27 = vadd.f32 %v2913_v46, %v2414_v9  ;;  %v981_v35 = vmul.f32 0.7978846, %v917_v7 }
 0x1eb   : > { %v982_v61 = vmul.f32 0.7978846, %v918_v4  ;;  %v793_v31 = vmul.f32 %v729_v16, %v2990_v41  ;;  %v3023_v18 = vadd.f32 %v2944_v38, %v2416_v10  ;;  %v920_v15 = vadd.f32 %v856_v29, %v2960_v21 }
 0x1ec   : > { %v1882_v17 = vpop.eup %1881  ;;  %1391 = vmatprep.mubr.f32.mxu1 %v1162_v11  ;;  %v1161_v50 = vmul.f32 %v1097_v57, %v649_v36  ;;  %v796_v20 = vmul.f32 %v732_v63, %v2997_v54  ;;  %1889 = vtanh.f32 %v2970_v56  ;;  %v858_v43 = vmul.f32 0.044715, %v794_v3 }
 0x1ed   : > { %v652_v46 = vmul.f32 0.5, %v2815_v44  ;;  %v1100_v13 = vadd.f32 1.0, %v1882_v17  ;;  %v734_v19 = vmul.f32 %v3023_v18, %v3023_v18  ;;  %v919_v10 = vadd.f32 %v855_v8, %v2968_v60 }
 0x1ee   : > { %v1884_v12 = vpop.eup %1883  ;;  %1392 = vmatmul.mubr.f32.gmra.mrb[34].mxu1 %v1161_v50  ;;  %v731_v38 = vmul.f32 %v3018_v27, %v3018_v27  ;;  %v3036_v32 = vadd.f32 %v2938_v14, %v2414_v9  ;;  %1891 = vtanh.f32 %v2955_v40  ;;  %v857_v56 = vmul.f32 0.044715, %v793_v31 }
 0x1ef   : > { %v1164_v52 = vmul.f32 %v1100_v13, %v652_v46  ;;  %v651_v44 = vmul.f32 0.5, %v2792_v62  ;;  %v1099_v30 = vadd.f32 1.0, %v1884_v12  ;;  %v984_v26 = vmul.f32 0.7978846, %v920_v15 }
 0x1f0   : > { %v860_v28 = vmul.f32 0.044715, %v796_v20  ;;  %v654_v37 = vmul.f32 0.5, %v2831_v25  ;;  %1893 = vtanh.f32 %v978_v53  ;;  %v922_v7 = vadd.f32 %v858_v43, %v2983_v1 }
 0x1f1   : > { %v1886_v51 = vpop.eup %1885  ;;  %1396 = vmatprep.mubr.f32.mxu1 %v1164_v52  ;;  %v1163_v34 = vmul.f32 %v1099_v30, %v651_v44  ;;  %v798_v9 = vmul.f32 %v734_v19, %v3023_v18  ;;  %1895 = vtanh.f32 %v2975_v2  ;;  %v795_v14 = vmul.f32 %v731_v38, %v3018_v27 }
 0x1f2   : > { %v1102_v40 = vadd.f32 1.0, %v1886_v51  ;;  %v733_v62 = vmul.f32 %v3036_v32, %v3036_v32  ;;  %1897 = vtanh.f32 %v980_v59  ;;  %v983_v4 = vmul.f32 0.7978846, %v919_v10 }
 0x1f3   : > { %v1888_v39 = vpop.eup %1887  ;;  %1397 = vmatmul.mubr.f32.gmra.mrb[36].mxu1 %v1163_v34  ;;  %v653_v25 = vmul.f32 0.5, %v2821_v55  ;;  %1899 = vtanh.f32 %v3002_v42  ;;  %v924_v53 = vadd.f32 %v860_v28, %v2997_v54  ;;  %v921_v2 = vadd.f32 %v857_v56, %v2990_v41 }
 0x1f4   : > { %v1166_v24 = vmul.f32 %v1102_v40, %v654_v37  ;;  %v1101_v16 = vadd.f32 1.0, %v1888_v39  ;;  %1901 = vtanh.f32 %v982_v61  ;;  %v986_v29 = vmul.f32 0.7978846, %v922_v7 }
 0x1f5   : > { %v862_v33 = vmul.f32 0.044715, %v798_v9  ;;  %1903 = vtanh.f32 %v981_v35  ;;  %v859_v63 = vmul.f32 0.044715, %v795_v14  ;;  %v797_v59 = vmul.f32 %v733_v62, %v3036_v32 }
 0x1f6   : > { %v1890_v49 = vpop.eup %1889  ;;  %1401 = vmatprep.mubr.f32.mxu1 %v1166_v24  ;;  %v1165_v47 = vmul.f32 %v1101_v16, %v653_v25  ;;  %1905 = vtanh.f32 %v984_v26  ;;  %v656_v55 = vmul.f32 0.5, %v2860_v48  ;;  %v988_v3 = vmul.f32 0.7978846, %v924_v53 }
 0x1f7   : > { %v1104_v42 = vadd.f32 1.0, %v1890_v49  ;;  %v655_v8 = vmul.f32 0.5, %v2843_v0  ;;  %v926_v11 = vadd.f32 %v862_v33, %v3023_v18  ;;  %1907 = vtanh.f32 %v986_v29 }
 0x1f8   : > { %v1892_v36 = vpop.eup %1891  ;;  %1402 = vmatmul.mubr.f32.gmra.mrb[38].mxu1 %v1165_v47  ;;  %v985_v31 = vmul.f32 0.7978846, %v921_v2  ;;  %v923_v17 = vadd.f32 %v859_v63, %v3018_v27  ;;  %v861_v15 = vmul.f32 0.044715, %v797_v59  ;;  %1909 = vtanh.f32 %v983_v4 }
 0x1f9   : > { %v1168_v57 = vmul.f32 %v1104_v42, %v656_v55  ;;  %v1103_v61 = vadd.f32 1.0, %v1892_v36  ;;  %v658_v20 = vmul.f32 0.5, %v2892_v23  ;;  %v657_v0 = vmul.f32 0.5, %v2870_v22 }
 0x1fa   : > { %v1894_v35 = vpop.eup %1893  ;;  %v660_v19 = vmul.f32 0.5, %v2920_v58  ;;  %v990_v10 = vmul.f32 0.7978846, %v926_v11  ;;  %1911 = vtanh.f32 %v988_v3  ;;  %v987_v44 = vmul.f32 0.7978846, %v923_v17 }
 0x1fb   : > { %v1896_v50 = vpop.eup %1895  ;;  %1406 = vmatprep.mubr.f32.mxu1 %v1168_v57  ;;  %v1167_v48 = vmul.f32 %v1103_v61, %v655_v8  ;;  %v1106_v43 = vadd.f32 1.0, %v1894_v35  ;;  %v925_v30 = vadd.f32 %v861_v15, %v3036_v32  ;;  %1913 = vtanh.f32 %v985_v31  ;;  %v3074_v15 = vld [vmem:[%s3199_s4] ss:$0 sm:$0xff] }
 0x1fc   : > { %v1898_v46 = vpop.eup %1897  ;;  %v1105_v13 = vadd.f32 1.0, %v1896_v50  ;;  %v662_v58 = vmul.f32 0.5, %v2934_v6  ;;  %v659_v7 = vmul.f32 0.5, %v2899_v5  ;;  %1915 = vtanh.f32 %v990_v10 }
 0x1fd   : > { %v1900_v12 = vpop.eup %1899  ;;  %1407 = vmatmul.mubr.f32.gmra.mrb[40].mxu1 %v1167_v48  ;;  %v1170_v38 = vmul.f32 %v1106_v43, %v658_v20  ;;  %v1108_v56 = vadd.f32 1.0, %v1898_v46  ;;  %v989_v34 = vmul.f32 0.7978846, %v925_v30  ;;  %1917 = vtanh.f32 %v987_v44 }
 0x1fe   : > { %v1902_v52 = vpop.eup %1901  ;;  %v1169_v23 = vmul.f32 %v1105_v13, %v657_v0  ;;  %v1107_v37 = vadd.f32 1.0, %v1900_v12  ;;  %v664_v25 = vmul.f32 0.5, %v2960_v21  ;;  %v661_v53 = vmul.f32 0.5, %v2927_v45 }
 0x1ff   : > { %v1904_v26 = vpop.eup %1903  ;;  %1411 = vmatprep.mubr.f32.mxu1 %v1170_v38  ;;  %v1172_v28 = vmul.f32 %v1108_v56, %v660_v19  ;;  %v1110_v22 = vadd.f32 1.0, %v1902_v52  ;;  %1919 = vtanh.f32 %v989_v34  ;;  %v666_v33 = vmul.f32 0.5, %v2983_v1 }
 0x200   : > { %v1906_v51 = vpop.eup %1905  ;;  %v1171_v62 = vmul.f32 %v1107_v37, %v659_v7  ;;  %v1109_v39 = vadd.f32 1.0, %v1904_v26  ;;  %v663_v49 = vmul.f32 0.5, %v2968_v60  ;;  %v668_v42 = vmul.f32 0.5, %v2997_v54 }
 0x201   : > { %1412 = vmatmul.mubr.f32.gmra.mrb[42].mxu1 %v1169_v23  ;;  %v1174_v9 = vmul.f32 %v1110_v22, %v662_v58  ;;  %v1112_v14 = vadd.f32 1.0, %v1906_v51  ;;  %v1908_v40 = vpop.eup %1907  ;;  %v665_v36 = vmul.f32 0.5, %v2990_v41  ;;  %v670_v60 = vmul.f32 0.5, %v3023_v18 }
 0x202   : > { %1416 = vmatprep.mubr.f32.mxu1 %v1172_v28  ;;  %v1910_v4 = vpop.eup %1909  ;;  %v1114_v24 = vadd.f32 1.0, %v1908_v40  ;;  %v1173_v16 = vmul.f32 %v1109_v39, %v661_v53  ;;  %v667_v61 = vmul.f32 0.5, %v3018_v27  ;;  %v669_v54 = vmul.f32 0.5, %v3036_v32 }
 0x203   : > { %v1176_v6 = vmul.f32 %v1112_v14, %v664_v25  ;;  %v1111_v2 = vadd.f32 1.0, %v1910_v4 }
 0x204   : > { %v1912_v5 = vpop.eup %1911  ;;  %v1178_v63 = vmul.f32 %v1114_v24, %v666_v33 }
 0x205   : > { %1417 = vmatmul.mubr.f32.gmra.mrb[44].mxu1 %v1171_v62  ;;  %v1914_v29 = vpop.eup %1913  ;;  %v1116_v47 = vadd.f32 1.0, %v1912_v5  ;;  %v1175_v59 = vmul.f32 %v1111_v2, %v663_v49 }
 0x206   : > { %1421 = vmatprep.mubr.f32.mxu1 %v1174_v9  ;;  %v1916_v21 = vpop.eup %1915  ;;  %v1113_v55 = vadd.f32 1.0, %v1914_v29 }
 0x207   : > { %v1918_v45 = vpop.eup %1917  ;;  %v1180_v3 = vmul.f32 %v1116_v47, %v668_v42  ;;  %v1118_v8 = vadd.f32 1.0, %v1916_v21 }
 0x208   : > { %v1177_v11 = vmul.f32 %v1113_v55, %v665_v36  ;;  %v1115_v1 = vadd.f32 1.0, %v1918_v45 }
 0x209   : > { %1422 = vmatmul.mubr.f32.gmra.mrb[46].mxu1 %v1173_v16  ;;  %v1920_v57 = vpop.eup %1919  ;;  %v1182_v35 = vmul.f32 %v1118_v8, %v670_v60 }
 0x20a   : > { %1426 = vmatprep.mubr.f32.mxu1 %v1176_v6  ;;  %v1179_v31 = vmul.f32 %v1115_v1, %v667_v61  ;;  %v1117_v17 = vadd.f32 1.0, %v1920_v57 }
 0x20c   : > { %v1181_v41 = vmul.f32 %v1117_v17, %v669_v54 }
 0x20d   : > { %1427 = vmatmul.mubr.f32.gmra.mrb[48].mxu1 %v1175_v59 }
 0x20e   : > { %1431 = vmatprep.mubr.f32.mxu1 %v1178_v63 }
 0x211   : > { %1432 = vmatmul.mubr.f32.gmra.mrb[50].mxu1 %v1177_v11 }
 0x212   : > { %1436 = vmatprep.mubr.f32.mxu1 %v1180_v3 }
 0x215   : > { %1437 = vmatmul.mubr.f32.gmra.mrb[52].mxu1 %v1179_v31 }
 0x216   : > { %1441 = vmatprep.mubr.f32.mxu1 %v1182_v35 }
 0x219   : > { %1442 = vmatmul.mubr.f32.gmra.mrb[54].mxu1 %v1181_v41 }
 0x251   : > { %v1288_v18 = vpop.f32.mrb[64].mxu0 }
 0x252   : > { %v1289_v50 = vadd.f32 %v3074_v15, %v1288_v18  ;;  %v1290_v48 = vpop.f32.mrb[65].mxu0 }
 0x254   : > { %1447 = vst [vmem:[%s3079_s10] sm:$0xff] %v1289_v50 }
 0x255   : > { %v1293_v27 = vpop.f32.mrb[66].mxu0 }
 0x256   : > { %v1294_v32 = vadd.f32 %v3074_v15, %v1293_v27  ;;  %v1295_v20 = vpop.f32.mrb[67].mxu0 }
 0x258   : > { %1448 = vst [vmem:[%s3079_s10 + $0x8] sm:$0xff] %v1294_v32 }
 0x259   : > { %v1298_v43 = vpop.f32.mrb[68].mxu0 }
 0x25a   : > { %v1299_v46 = vadd.f32 %v3074_v15, %v1298_v43  ;;  %v1300_v0 = vpop.f32.mrb[69].mxu0 }
 0x25c   : > { %1449 = vst [vmem:[%s3079_s10 + $0x10] sm:$0xff] %v1299_v46 }
 0x25d   : > { %v1303_v13 = vpop.f32.mrb[70].mxu0 }
 0x25e   : > { %v1304_v19 = vadd.f32 %v3074_v15, %v1303_v13  ;;  %v1305_v12 = vpop.f32.mrb[71].mxu0 }
 0x260   : > { %1450 = vst [vmem:[%s3079_s10 + $0x18] sm:$0xff] %v1304_v19 }
 0x269   : > { %v1308_v10 = vpop.f32.mrb[0].mxu1 }
 0x26a   : > { %v1309_v38 = vadd.f32 %v3074_v15, %v1308_v10  ;;  %v1310_v56 = vpop.f32.mrb[1].mxu1 }
 0x26c   : > { %1451 = vst [vmem:[%s3079_s10 + $0x20] sm:$0xff] %v1309_v38 }
 0x26d   : > { %v1313_v52 = vpop.f32.mrb[2].mxu1 }
 0x26e   : > { %v1314_v44 = vadd.f32 %v3074_v15, %v1313_v52  ;;  %v1315_v30 = vpop.f32.mrb[3].mxu1 }
 0x270   : > { %1452 = vst [vmem:[%s3079_s10 + $0x28] sm:$0xff] %v1314_v44 }
 0x271   : > { %v1318_v26 = vpop.f32.mrb[4].mxu1 }
 0x272   : > { %v1319_v23 = vadd.f32 %v3074_v15, %v1318_v26  ;;  %v1320_v28 = vpop.f32.mrb[5].mxu1 }
 0x274   : > { %1453 = vst [vmem:[%s3079_s10 + $0x30] sm:$0xff] %v1319_v23 }
 0x27c   : > { %v1323_v37 = vpop.f32.mrb[6].mxu1 }
 0x27d   : > { %v1324_v22 = vadd.f32 %v3074_v15, %v1323_v37  ;;  %v1325_v51 = vpop.f32.mrb[7].mxu1 }
 0x27f   : > { %1454 = vst [vmem:[%s3079_s10 + $0x38] sm:$0xff] %v1324_v22 }
 0x281   : > { %v1328_v58 = vpop.f32.mrb[8].mxu1 }
 0x282   : > { %v1329_v7 = vadd.f32 %v3074_v15, %v1328_v58  ;;  %v1330_v34 = vpop.f32.mrb[9].mxu1 }
 0x284   : > { %1455 = vst [vmem:[%s3079_s10 + $0x40] sm:$0xff] %v1329_v7 }
 0x285   : > { %v1333_v9 = vpop.f32.mrb[10].mxu1 }
 0x286   : > { %v1334_v14 = vadd.f32 %v3074_v15, %v1333_v9  ;;  %v1335_v40 = vpop.f32.mrb[11].mxu1 }
 0x288   : > { %1456 = vst [vmem:[%s3079_s10 + $0x48] sm:$0xff] %v1334_v14 }
 0x289   : > { %v1338_v62 = vpop.f32.mrb[12].mxu1 }
 0x28a   : > { %v1339_v39 = vadd.f32 %v3074_v15, %v1338_v62  ;;  %v1340_v4 = vpop.f32.mrb[13].mxu1 }
 0x28c   : > { %1457 = vst [vmem:[%s3079_s10 + $0x50] sm:$0xff] %v1339_v39 }
 0x290   : > { %v1343_v25 = vpop.f32.mrb[14].mxu1 }
 0x291   : > { %v1344_v53 = vadd.f32 %v3074_v15, %v1343_v25  ;;  %v1345_v6 = vpop.f32.mrb[15].mxu1 }
 0x293   : > { %1458 = vst [vmem:[%s3079_s10 + $0x58] sm:$0xff] %v1344_v53 }
 0x294   : > { %v1348_v24 = vpop.f32.mrb[16].mxu1 }
 0x295   : > { %v1349_v5 = vadd.f32 %v3074_v15, %v1348_v24  ;;  %v1350_v16 = vpop.f32.mrb[17].mxu1 }
 0x297   : > { %1459 = vst [vmem:[%s3079_s10 + $0x60] sm:$0xff] %v1349_v5 }
 0x298   : > { %v1353_v2 = vpop.f32.mrb[18].mxu1 }
 0x299   : > { %v1354_v29 = vadd.f32 %v3074_v15, %v1353_v2  ;;  %v1355_v33 = vpop.f32.mrb[19].mxu1 }
 0x29b   : > { %1460 = vst [vmem:[%s3079_s10 + $0x68] sm:$0xff] %v1354_v29 }
 0x29e   : > { %v1358_v49 = vpop.f32.mrb[20].mxu1 }
 0x29f   : > { %v1359_v63 = vadd.f32 %v3074_v15, %v1358_v49  ;;  %v1360_v47 = vpop.f32.mrb[21].mxu1 }
 0x2a1   : > { %1461 = vst [vmem:[%s3079_s10 + $0x70] sm:$0xff] %v1359_v63 }
 0x2a3   : > { %v1363_v21 = vpop.f32.mrb[22].mxu1 }
 0x2a4   : > { %v1364_v59 = vadd.f32 %v3074_v15, %v1363_v21  ;;  %v1365_v55 = vpop.f32.mrb[23].mxu1 }
 0x2a6   : > { %1462 = vst [vmem:[%s3079_s10 + $0x78] sm:$0xff] %v1364_v59 }
 0x2a8   : > { %v1368_v45 = vpop.f32.mrb[24].mxu1 }
 0x2a9   : > { %v1369_v42 = vadd.f32 %v3074_v15, %v1368_v45  ;;  %v1370_v36 = vpop.f32.mrb[25].mxu1 }
 0x2ab   : > { %1463 = vst [vmem:[%s3079_s10 + $0x80] sm:$0xff] %v1369_v42 }
 0x2ad   : > { %v1373_v3 = vpop.f32.mrb[26].mxu1 }
 0x2ae   : > { %v1374_v8 = vadd.f32 %v3074_v15, %v1373_v3  ;;  %v1375_v11 = vpop.f32.mrb[27].mxu1 }
 0x2b0   : > { %1464 = vst [vmem:[%s3079_s10 + $0x88] sm:$0xff] %v1374_v8 }
 0x2b2   : > { %v1378_v1 = vpop.f32.mrb[28].mxu1 }
 0x2b3   : > { %v1379_v57 = vadd.f32 %v3074_v15, %v1378_v1  ;;  %v1380_v60 = vpop.f32.mrb[29].mxu1 }
 0x2b5   : > { %1465 = vst [vmem:[%s3079_s10 + $0x90] sm:$0xff] %v1379_v57 }
 0x2b7   : > { %v1383_v61 = vpop.f32.mrb[30].mxu1 }
 0x2b8   : > { %v1384_v35 = vadd.f32 %v3074_v15, %v1383_v61  ;;  %v1385_v31 = vpop.f32.mrb[31].mxu1 }
 0x2ba   : > { %1466 = vst [vmem:[%s3079_s10 + $0x98] sm:$0xff] %v1384_v35 }
 0x2bc   : > { %v1388_v17 = vpop.f32.mrb[32].mxu1 }
 0x2bd   : > { %v1389_v54 = vadd.f32 %v3074_v15, %v1388_v17  ;;  %v1390_v41 = vpop.f32.mrb[33].mxu1 }
 0x2bf   : > { %1467 = vst [vmem:[%s3079_s10 + $0xa0] sm:$0xff] %v1389_v54 }
 0x2c1   : > { %v1393_v18 = vpop.f32.mrb[34].mxu1 }
 0x2c2   : > { %v1394_v50 = vadd.f32 %v3074_v15, %v1393_v18  ;;  %v1395_v48 = vpop.f32.mrb[35].mxu1 }
 0x2c4   : > { %1468 = vst [vmem:[%s3079_s10 + $0xa8] sm:$0xff] %v1394_v50 }
 0x2c6   : > { %v1398_v27 = vpop.f32.mrb[36].mxu1 }
 0x2c7   : > { %v1399_v32 = vadd.f32 %v3074_v15, %v1398_v27  ;;  %v1400_v20 = vpop.f32.mrb[37].mxu1 }
 0x2c9   : > { %1469 = vst [vmem:[%s3079_s10 + $0xb0] sm:$0xff] %v1399_v32 }
 0x2cb   : > { %v1403_v43 = vpop.f32.mrb[38].mxu1 }
 0x2cc   : > { %v1404_v46 = vadd.f32 %v3074_v15, %v1403_v43  ;;  %v1405_v0 = vpop.f32.mrb[39].mxu1 }
 0x2ce   : > { %1470 = vst [vmem:[%s3079_s10 + $0xb8] sm:$0xff] %v1404_v46 }
 0x2d0   : > { %v1408_v13 = vpop.f32.mrb[40].mxu1 }
 0x2d1   : > { %v1409_v19 = vadd.f32 %v3074_v15, %v1408_v13  ;;  %v1410_v12 = vpop.f32.mrb[41].mxu1 }
 0x2d3   : > { %1471 = vst [vmem:[%s3079_s10 + $0xc0] sm:$0xff] %v1409_v19 }
 0x2d4   : > { %v1413_v10 = vpop.f32.mrb[42].mxu1 }
 0x2d5   : > { %v1414_v38 = vadd.f32 %v3074_v15, %v1413_v10  ;;  %v1415_v56 = vpop.f32.mrb[43].mxu1 }
 0x2d7   : > { %1472 = vst [vmem:[%s3079_s10 + $0xc8] sm:$0xff] %v1414_v38 }
 0x2d8   : > { %v1418_v52 = vpop.f32.mrb[44].mxu1 }
 0x2d9   : > { %v1419_v44 = vadd.f32 %v3074_v15, %v1418_v52  ;;  %v1420_v30 = vpop.f32.mrb[45].mxu1 }
 0x2db   : > { %1473 = vst [vmem:[%s3079_s10 + $0xd0] sm:$0xff] %v1419_v44 }
 0x2dc   : > { %v1423_v26 = vpop.f32.mrb[46].mxu1 }
 0x2dd   : > { %v1424_v23 = vadd.f32 %v3074_v15, %v1423_v26  ;;  %v1425_v28 = vpop.f32.mrb[47].mxu1 }
 0x2df   : > { %1474 = vst [vmem:[%s3079_s10 + $0xd8] sm:$0xff] %v1424_v23 }
 0x2e0   : > { %v1428_v37 = vpop.f32.mrb[48].mxu1 }
 0x2e1   : > { %v1429_v22 = vadd.f32 %v3074_v15, %v1428_v37  ;;  %v1430_v51 = vpop.f32.mrb[49].mxu1 }
 0x2e3   : > { %1475 = vst [vmem:[%s3079_s10 + $0xe0] sm:$0xff] %v1429_v22 }
 0x2e4   : > { %v1433_v58 = vpop.f32.mrb[50].mxu1 }
 0x2e5   : > { %v1434_v7 = vadd.f32 %v3074_v15, %v1433_v58  ;;  %v1435_v34 = vpop.f32.mrb[51].mxu1 }
 0x2e7   : > { %1476 = vst [vmem:[%s3079_s10 + $0xe8] sm:$0xff] %v1434_v7 }
 0x2e8   : > { %v1438_v9 = vpop.f32.mrb[52].mxu1 }
 0x2e9   : > { %v1439_v14 = vadd.f32 %v3074_v15, %v1438_v9  ;;  %v1440_v40 = vpop.f32.mrb[53].mxu1 }
 0x2eb   : > { %1477 = vst [vmem:[%s3079_s10 + $0xf0] sm:$0xff] %v1439_v14 }
 0x2ec   : > { %v1443_v62 = vpop.f32.mrb[54].mxu1 }
 0x2ed   : > { %v1444_v39 = vadd.f32 %v3074_v15, %v1443_v62  ;;  %v1445_v4 = vpop.f32.mrb[55].mxu1 }
 0x2ef   : > { %1478 = vst [vmem:[%s3079_s10 + $0xf8] sm:$0xff] %v1444_v39 }
 0x2f0   : > { %2020 = shalt.err (!%p2017_p2)
}
 0x2f1   : > { %s2021_s14 = scalar_lea.hbm %s3147_s11, 4096  ;;  %s2025_s12 = scalar_lea.hbm %s3200_s5, 8192 }
 0x2f2   : > { %p2022_p13 = scmp.ne.s32.totalorder %s3147_s11, %s2021_s14  ;;  %p2026_p4 = scmp.lt.u32.totalorder %s3147_s11, %s3200_s5 }
 0x2f3   : > { %p2027_p7 = scmp.lt.u32.totalorder %s2025_s12, %s2021_s14  ;;  %p2029_p11 = scmp.lt.u32.totalorder %s2021_s14, %s3147_s11 }
 0x2f4   : > { %p2023_p6 = pnand %p2022_p13, %p3214_p0 }
 0x2f5   : > { %p2028_p8 = por %p2027_p7, %p2026_p4 }
 0x2f6   : > { %p2024_p10 = pneg %p2023_p6 }
 0x2f7   : > { %p2030_p1 = por %p2029_p11, %p2028_p8 }
 0x2f9   : > { %p2031_p3 = pnand %p2030_p1, %p2024_p10 }
 0x2fb   : > { %2034 = shalt.err (!%p2031_p3)
}
 0x2fc   : > { %s2089_s28 = smov 128   ;;  %s2090_s9 = smov 8  }
 0x2fd   : > { %1728 = dma.vmem_to_hbm [thread:$0]  (%p3214_p0), %s3149_s15, 4096, %s3147_s11, %s1480_s23, %s2089_s28, %s2089_s28, %s2090_s9  }
 0x2fe PF: > { %s1508_s30 = sand.u32 1, %s2065_s18   ;;  %p3215_p5 = scmp.ne.s32.totalorder %s3205_s25, 0 }
 0x2ff   : > { %p3216_p9 = scmp.ge.s32.totalorder %s2077_s21, 2  ;;  %s1509_s7 = scalar_lea.sflag [#allocation4], %s1508_s30 }
 0x301   : > { %p1742_p12 = pnand %p3216_p9, %p3215_p5 }
 0x303   : > { %2060 = dma.done.wait (!%p1742_p12), %s1509_s7, 4096  }
 0x304   : > { %2062 = vsyncadd (!%p1742_p12), %s1509_s7, 4294963200  ;;  %p19_p2 = scmp.ge.s32.totalorder %s2234_s16, 4   ;;  %s3217_s18 = smov %s2069_s19 }
 0x305   : > { %s3218_s19 = smov %s2073_s20  ;;  %s3219_s20 = smov %s2243_s27 }
 0x306   : > { %s3220_s21 = smov %s2234_s16  ;;  %21 = sbr.rel (!%p19_p2) target bundleno = 6 (0x6), region = 93 }
 0x30d   :  { %1514 = vsyncpa [#allocation3], 1 }
 0x30e   :  { %1516 = vsyncpa [#allocation3 + $0x1], 1 }
 0x30f   :  { %1517 = vsyncpa [#allocation6], 1 }
 0x310   :  { %1518 = vsyncpa [#allocation4], 1 }
 0x311   :  { %1520 = vsyncpa [#allocation4 + $0x1], 1 }

</bundles_post_ra>
